<compile_context>
chip_gen: v5e
topology: v5e:2x2
jax: 0.10.0
libtpu: 0.0.40
codegen_flags: <defaults>
</compile_context>

<pallas_src>
import functools

import jax
import jax.numpy as jnp
from jax import lax
from jax.experimental import pallas as pl
from jax.experimental.pallas import tpu as pltpu


def _round_up(x: int, m: int) -> int:
    return ((x + m - 1) // m) * m


def _mads2_nwd_kernel(key_ref, value_ref, query_ref, w_ref, wo_ref, out_ref,
                      *, kernel: str, mxu_dtype, approx_recip: bool):
    # key_ref:   (1, N, Kp)   value_ref: (1, N, Vp)   query_ref: (1, TQ, Kp)
    # w_ref:     (1, Kp)      wo_ref:    (1, Vp)      out_ref:   (1, TQ, Vp)
    w = w_ref[...]
    k = key_ref[0] * w                      # (N, Kp)  scaled keys
    q = query_ref[0] * w                    # (TQ, Kp) scaled queries
    v = value_ref[0]                        # (N, Vp)

    # cross[j, i] = <q_j, k_i>  -> (TQ, N), keys on the lane axis.  Contracting
    # the last axis of both operands avoids any N x N transpose.
    cross = lax.dot_general(
        q.astype(mxu_dtype), k.astype(mxu_dtype),
        dimension_numbers=(((1,), (1,)), ((), ())),
        preferred_element_type=jnp.float32)                 # (TQ, N)

    kn = jnp.sum(k * k, axis=-1, keepdims=True)             # (N, 1) ||k||^2

    if kernel == 'gauss':
        # Softmax over keys is invariant to per-query constants, so the
        # ||q||^2 term cancels: -(||q||^2 + ||k||^2 - 2 q.k)/2 == q.k - ||k||^2/2.
        logits = cross - 0.5 * kn.T                         # (TQ, N)
    else:  # 'exp' needs the true distance
        qn = jnp.sum(q * q, axis=-1, keepdims=True)         # (TQ, 1)
        d2 = jnp.maximum(kn.T + qn - 2.0 * cross, 0.0)
        logits = -0.5 * jnp.sqrt(d2)

    # Numerically stable softmax over keys (axis=-1); normalization deferred
    # until after the value matmul so `attn` is never materialized.
    m = jnp.max(logits, axis=-1, keepdims=True)             # (TQ, 1)
    e = jnp.exp(logits - m)                                 # (TQ, N)
    denom = jnp.sum(e, axis=-1, keepdims=True)              # (TQ, 1)

    ctx = jnp.dot(e.astype(mxu_dtype), v.astype(mxu_dtype),
                  preferred_element_type=jnp.float32)       # (TQ, Vp)

    inv = pl.reciprocal(denom, approx=approx_recip)         # (TQ, 1)
    out_ref[0] = (ctx * inv * wo_ref[...]).astype(out_ref.dtype)


def mads2_forward(KEY, VALUE, QUERY, W, Wo, *, kernel='gauss', tq=128,
                  precise=False):
    """Pallas-backed forward pass of mads2 (type='nwd').

    precise=False (default): bf16 MXU operands + approx EUP reciprocal (fast).
    precise=True: f32 MXU operands + exact reciprocal (tight validation).
    """
    B, N, K = KEY.shape
    _, _, V = VALUE.shape
    assert QUERY.shape == (B, N, K)
    assert kernel in ('gauss', 'exp')

    # Lane-dense feature axes: zero-pad K and V up to multiples of 128.
    Kp = _round_up(K, 128)
    Vp = _round_up(V, 128)

    def pad_last(x, new):
        x = x.astype(jnp.float32)
        pad = new - x.shape[-1]
        if pad == 0:
            return x
        return jnp.pad(x, [(0, 0)] * (x.ndim - 1) + [(0, pad)])

    KEYp = pad_last(KEY, Kp)
    QUERYp = pad_last(QUERY, Kp)
    VALUEp = pad_last(VALUE, Vp)
    W2 = pad_last(W.reshape(1, K), Kp)
    Wo2 = pad_last(Wo.reshape(1, V), Vp)

    # Query-axis tiling: bounds per-step scratch to TQ x N and gives the grid
    # enough parallel steps for megacore / the two TensorCores of v7x.
    TQ = N if N <= tq else tq
    n_q = pl.cdiv(N, TQ)

    mxu_dtype = jnp.float32 if precise else jnp.bfloat16
    kern = functools.partial(_mads2_nwd_kernel, kernel=kernel,
                             mxu_dtype=mxu_dtype, approx_recip=not precise)

    out = pl.pallas_call(
        kern,
        out_shape=jax.ShapeDtypeStruct((B, N, Vp), jnp.float32),
        grid=(B, n_q),
        in_specs=[
            pl.BlockSpec((1, N, Kp), lambda b, qi: (b, 0, 0)),    # KEY (full N)
            pl.BlockSpec((1, N, Vp), lambda b, qi: (b, 0, 0)),    # VALUE (full N)
            pl.BlockSpec((1, TQ, Kp), lambda b, qi: (b, qi, 0)),  # QUERY tile
            pl.BlockSpec((1, Kp), lambda b, qi: (0, 0)),          # W
            pl.BlockSpec((1, Vp), lambda b, qi: (0, 0)),          # Wo
        ],
        out_specs=pl.BlockSpec((1, TQ, Vp), lambda b, qi: (b, qi, 0)),
        compiler_params=pltpu.CompilerParams(
            dimension_semantics=("parallel", "parallel"),
            # Within the v7x 64 MiB physical / 32 MiB default scoped budget;
            # raises the v5e 16 MiB default a bit for headroom.
            vmem_limit_bytes=32 * 1024 * 1024),
    )(KEYp, VALUEp, QUERYp, W2, Wo2)

    return out[..., :V]


def mads2_reference(KEY, VALUE, QUERY, W, Wo, *, kernel='gauss'):
    """Pure-JAX reference mirroring the PyTorch nwd path."""
    Ks = KEY * W[None, None, :]
    Qs = QUERY * W[None, None, :]
    diff = Ks[:, :, None, :] - Qs[:, None, :, :]           # (B, Nk, Nq, K)
    dist = jnp.sqrt(jnp.maximum(jnp.sum(diff * diff, axis=-1), 0.0))
    if kernel == 'gauss':
        logits = -(dist ** 2) / 2.0
    else:
        logits = -dist / 2.0
    attn = jax.nn.softmax(logits, axis=1)                   # softmax over keys
    context = jnp.einsum('bij,bik->bjk', attn, VALUE)       # (B, Nq, V)
    return context * Wo[None, None, :]


if __name__ == "__main__":
    # batch=2, nbpoints=256, input_k=4, input_v=4 (as implied by mads2).
    B, N, K, V = 2, 256, 4, 4

    key0 = jax.random.PRNGKey(0)
    k1, k2, k3 = jax.random.split(key0, 3)
    KEY = jax.random.normal(k1, (B, N, K), dtype=jnp.float32)
    VALUE = jax.random.normal(k2, (B, N, V), dtype=jnp.float32)
    QUERY = jax.random.normal(k3, (B, N, K), dtype=jnp.float32)

    # Parameters as in mads2.__init__: W = ones(input_k), Wo = ones(input_v).
    W = jnp.ones((K,), dtype=jnp.float32)
    Wo = jnp.ones((V,), dtype=jnp.float32)

    ref_g = mads2_reference(KEY, VALUE, QUERY, W, Wo, kernel='gauss')

    # Precise path (f32 MXU operands, exact reciprocal): tight check.
    out_precise = jax.block_until_ready(
        mads2_forward(KEY, VALUE, QUERY, W, Wo, kernel='gauss', precise=True))
    assert out_precise.shape == (B, N, V)
    assert jnp.allclose(out_precise, ref_g, atol=1e-4, rtol=1e-4), \
        f"gauss/precise max abs err {jnp.max(jnp.abs(out_precise - ref_g))}"

    # Fast path (bf16 MXU operands + approx EUP reciprocal): loose check.
    out_fast = jax.block_until_ready(
        mads2_forward(KEY, VALUE, QUERY, W, Wo, kernel='gauss'))
    assert out_fast.shape == (B, N, V)
    assert jnp.allclose(out_fast, ref_g, atol=5e-2, rtol=5e-2), \
        f"gauss/fast max abs err {jnp.max(jnp.abs(out_fast - ref_g))}"

    # Also exercise the 'exp' kernel path (true-distance branch).
    ref_e = mads2_reference(KEY, VALUE, QUERY, W, Wo, kernel='exp')
    out_e = jax.block_until_ready(
        mads2_forward(KEY, VALUE, QUERY, W, Wo, kernel='exp', precise=True))
    assert jnp.allclose(out_e, ref_e, atol=1e-4, rtol=1e-4), \
        f"exp/precise max abs err {jnp.max(jnp.abs(out_e - ref_e))}"

    print("KERNEL_OK")
</pallas_src>

<mosaic_0001>
module attributes {stable_mosaic.version = 11 : i64} {
  func.func @_mads2_nwd_kernel(%arg0: i32, %arg1: i32, %arg2: memref<1x256x128xf32, #tpu.memory_space<vmem>>, %arg3: memref<1x256x128xf32, #tpu.memory_space<vmem>>, %arg4: memref<1x128x128xf32, #tpu.memory_space<vmem>>, %arg5: memref<1x128xf32, #tpu.memory_space<vmem>>, %arg6: memref<1x128xf32, #tpu.memory_space<vmem>>, %arg7: memref<1x128x128xf32, #tpu.memory_space<vmem>>) attributes {dimension_semantics = [#tpu.dimension_semantics<parallel>, #tpu.dimension_semantics<parallel>], iteration_bounds = array<i64: 2, 2>, scalar_prefetch = 0 : i64, scratch_operands = 0 : i64, tpu.core_type = #tpu.core_type<tc>, window_params = [{transform_indices = @transform_0, window_bounds = array<i64: 1, 256, 128>}, {transform_indices = @transform_1, window_bounds = array<i64: 1, 256, 128>}, {transform_indices = @transform_2, window_bounds = array<i64: 1, 128, 128>}, {pipeline_mode = #tpu.pipeline_mode<synchronous>, transform_indices = @transform_3, window_bounds = array<i64: 1, 128>}, {pipeline_mode = #tpu.pipeline_mode<synchronous>, transform_indices = @transform_4, window_bounds = array<i64: 1, 128>}, {transform_indices = @transform_5, window_bounds = array<i64: 1, 128, 128>}]} {
    %c0 = arith.constant 0 : index
    %c0_0 = arith.constant 0 : index
    %0 = vector.load %arg5[%c0, %c0_0] : memref<1x128xf32, #tpu.memory_space<vmem>>, vector<1x128xf32>
    %c0_1 = arith.constant 0 : index
    %c0_2 = arith.constant 0 : index
    %c0_3 = arith.constant 0 : index
    %1 = vector.load %arg2[%c0_1, %c0_2, %c0_3] : memref<1x256x128xf32, #tpu.memory_space<vmem>>, vector<1x256x128xf32>
    %2 = vector.shape_cast %1 : vector<1x256x128xf32> to vector<256x128xf32>
    %3 = vector.broadcast %0 : vector<1x128xf32> to vector<256x128xf32>
    %4 = arith.mulf %2, %3 : vector<256x128xf32>
    %c0_4 = arith.constant 0 : index
    %c0_5 = arith.constant 0 : index
    %c0_6 = arith.constant 0 : index
    %5 = vector.load %arg4[%c0_4, %c0_5, %c0_6] : memref<1x128x128xf32, #tpu.memory_space<vmem>>, vector<1x128x128xf32>
    %6 = vector.shape_cast %5 : vector<1x128x128xf32> to vector<128x128xf32>
    %7 = vector.broadcast %0 : vector<1x128xf32> to vector<128x128xf32>
    %8 = arith.mulf %6, %7 : vector<128x128xf32>
    %c0_7 = arith.constant 0 : index
    %c0_8 = arith.constant 0 : index
    %c0_9 = arith.constant 0 : index
    %9 = vector.load %arg3[%c0_7, %c0_8, %c0_9] : memref<1x256x128xf32, #tpu.memory_space<vmem>>, vector<1x256x128xf32>
    %10 = vector.shape_cast %9 : vector<1x256x128xf32> to vector<256x128xf32>
    %cst = arith.constant dense<0.000000e+00> : vector<128x256xf32>
    %11 = tpu.matmul %8, %4, %cst {dimension_numbers = #tpu.dot_dimension_numbers<[1], [1], [0], [0], [0, 0, 1, 0], [], []>} : vector<128x128xf32>, vector<256x128xf32>, vector<128x256xf32> -> vector<128x256xf32>
    %12 = arith.mulf %4, %4 : vector<256x128xf32>
    %cst_10 = arith.constant dense<0.000000e+00> : vector<256xf32>
    %13 = vector.multi_reduction <add>, %12, %cst_10 [1] : vector<256x128xf32> to vector<256xf32>
    %14 = vector.shape_cast %13 : vector<256xf32> to vector<256x1xf32>
    %15 = tpu.transpose %14, [1, 0] : vector<256x1xf32> -> vector<1x256xf32>
    %cst_11 = arith.constant 5.000000e-01 : f32
    %16 = vector.broadcast %cst_11 : f32 to vector<1x256xf32>
    %17 = arith.mulf %16, %15 : vector<1x256xf32>
    %18 = vector.broadcast %17 : vector<1x256xf32> to vector<128x256xf32>
    %19 = arith.subf %11, %18 : vector<128x256xf32>
    %cst_12 = arith.constant dense<0xFF800000> : vector<128xf32>
    %20 = vector.multi_reduction <maximumf>, %19, %cst_12 [1] : vector<128x256xf32> to vector<128xf32>
    %21 = vector.shape_cast %20 : vector<128xf32> to vector<128x1xf32>
    %22 = vector.broadcast %21 : vector<128x1xf32> to vector<128x256xf32>
    %23 = arith.subf %19, %22 : vector<128x256xf32>
    %24 = math.exp %23 : vector<128x256xf32>
    %cst_13 = arith.constant dense<0.000000e+00> : vector<128xf32>
    %25 = vector.multi_reduction <add>, %24, %cst_13 [1] : vector<128x256xf32> to vector<128xf32>
    %26 = vector.shape_cast %25 : vector<128xf32> to vector<128x1xf32>
    %cst_14 = arith.constant dense<0.000000e+00> : vector<128x128xf32>
    %27 = tpu.matmul %24, %10, %cst_14 {dimension_numbers = #tpu.dot_dimension_numbers<[1], [0], [0], [1], [0, 0, 1, 1], [], []>} : vector<128x256xf32>, vector<256x128xf32>, vector<128x128xf32> -> vector<128x128xf32>
    %28 = tpu.reciprocal %26 : vector<128x1xf32> -> vector<128x1xf32>
    %29 = vector.broadcast %28 : vector<128x1xf32> to vector<128x128xf32>
    %30 = arith.mulf %27, %29 : vector<128x128xf32>
    %c0_15 = arith.constant 0 : index
    %c0_16 = arith.constant 0 : index
    %31 = vector.load %arg6[%c0_15, %c0_16] : memref<1x128xf32, #tpu.memory_space<vmem>>, vector<1x128xf32>
    %32 = vector.broadcast %31 : vector<1x128xf32> to vector<128x128xf32>
    %33 = arith.mulf %30, %32 : vector<128x128xf32>
    %c0_17 = arith.constant 0 : index
    %c0_18 = arith.constant 0 : index
    %c0_19 = arith.constant 0 : index
    %34 = vector.load %arg7[%c0_17, %c0_18, %c0_19] : memref<1x128x128xf32, #tpu.memory_space<vmem>>, vector<1x128x128xf32>
    %35 = vector.shape_cast %34 : vector<1x128x128xf32> to vector<128x128xf32>
    %36 = vector.shape_cast %33 : vector<128x128xf32> to vector<1x128x128xf32>
    tpu.vector_store %arg7[%c0_17, %c0_18, %c0_19], %36 {strides = array<i32>} : memref<1x128x128xf32, #tpu.memory_space<vmem>>, vector<1x128x128xf32>,
    return
  }
  func.func @transform_0(%arg0: i32, %arg1: i32) -> (i32, i32, i32) {
    %c0_i32 = arith.constant 0 : i32
    %c0_i32_0 = arith.constant 0 : i32
    %c0_i32_1 = arith.constant 0 : i32
    return %arg0, %c0_i32, %c0_i32_0 : i32, i32, i32
  }
  func.func @transform_1(%arg0: i32, %arg1: i32) -> (i32, i32, i32) {
    %c0_i32 = arith.constant 0 : i32
    %c0_i32_0 = arith.constant 0 : i32
    %c0_i32_1 = arith.constant 0 : i32
    return %arg0, %c0_i32, %c0_i32_0 : i32, i32, i32
  }
  func.func @transform_2(%arg0: i32, %arg1: i32) -> (i32, i32, i32) {
    %c0_i32 = arith.constant 0 : i32
    %c0_i32_0 = arith.constant 0 : i32
    return %arg0, %arg1, %c0_i32 : i32, i32, i32
  }
  func.func @transform_3(%arg0: i32, %arg1: i32) -> (i32, i32) {
    %c0_i32 = arith.constant 0 : i32
    %c0_i32_0 = arith.constant 0 : i32
    %c0_i32_1 = arith.constant 0 : i32
    return %c0_i32, %c0_i32_0 : i32, i32
  }
  func.func @transform_4(%arg0: i32, %arg1: i32) -> (i32, i32) {
    %c0_i32 = arith.constant 0 : i32
    %c0_i32_0 = arith.constant 0 : i32
    %c0_i32_1 = arith.constant 0 : i32
    return %c0_i32, %c0_i32_0 : i32, i32
  }
  func.func @transform_5(%arg0: i32, %arg1: i32) -> (i32, i32, i32) {
    %c0_i32 = arith.constant 0 : i32
    %c0_i32_0 = arith.constant 0 : i32
    return %arg0, %arg1, %c0_i32 : i32, i32, i32
  }
}

</mosaic_0001>

<bundles_post_ra>
// kernel: tpu_custom_call.1
= control target key start
LH: loop header
LB: loop body
LE: loop exit
PB: predicated region body
PF: predicated region fallthrough
CT: control target
= control target key end

     0   :  { %s2737_s0 = inlined_call_operand.hbm [shape: f32[2,256,128], index: 0, kind: input, shape index: {}]   ;;  %s2738_s1 = inlined_call_operand.hbm [shape: f32[2,256,128], index: 1, kind: input, shape index: {}]   ;;  %s2739_s2 = inlined_call_operand.hbm [shape: f32[2,256,128], index: 2, kind: input, shape index: {}]   ;;  %s2740_s3 = inlined_call_operand.vmem [shape: f32[1,128], index: 3, kind: input, shape index: {}]   ;;  %s2741_s4 = inlined_call_operand.vmem [shape: f32[1,128], index: 4, kind: input, shape index: {}]   ;;  %s2742_s5 = inlined_call_operand.hbm [shape: f32[2,256,128], index: 5, kind: output, shape index: {}]  }
   0x1   :  { %2755 = sst [smem:[#allocation21_spill]] %s2737_s0 }
   0x2   :  { %2756 = sst [smem:[#allocation22_spill]] %s2738_s1 }
   0x3   :  { %2757 = sst [smem:[#allocation23_spill]] %s2740_s3 }
   0x4   :  { %2758 = sst [smem:[#allocation24_spill]] %s2741_s4 }
   0x5   :  { %2759 = sst [smem:[#allocation25_spill]] %s2742_s5 }
   0x6   :  { %10 = vsyncpa [#allocation3], 0 }
   0x7   :  { %12 = vsyncpa [#allocation3 + $0x1], 0 }
   0x8   :  { %13 = vsyncpa [#allocation6], 0 }
   0x9   :  { %15 = vsyncpa [#allocation6 + $0x1], 0 }
   0xa   :  { %16 = vsyncpa [#allocation4], 0 }
   0xb   :  { %18 = vsyncpa [#allocation4 + $0x1], 0  ;;  %s2050_s18 = smov 0   ;;  %s2052_s19 = smov 0  }
   0xc   :  { %s2054_s20 = smov 0   ;;  %s2056_s21 = smov 0  }
   0xd   :  { %s2058_s22 = smov 0   ;;  %s2060_s23 = smov 0  }
   0xe   :  { %s2062_s24 = smov 0   ;;  %s2064_s25 = smov 0  }
   0xf   :  { %s2066_s26 = smov 0   ;;  %s2068_s27 = smov 0  }
  0x10   :  { %s2070_s28 = smov 0  }
  0x11 LB: > { %2760 = sst [smem:[#allocation13_spill]] %s1974_s18  ;;  %s2104_s29 = sadd.s32 4294967295, %s2014_s28   ;;  %s2014_s28 = sphi %s2070_s28, %s24_s28   ;;  %s2010_s27 = sphi %s2068_s27, %s2801_s27   ;;  %s2006_s26 = sphi %s2066_s26, %s2800_s26   ;;  %s2002_s25 = sphi %s2064_s25, %s2799_s25   ;;  %s1998_s24 = sphi %s2062_s24, %s2798_s24   ;;  %s1994_s23 = sphi %s2060_s23, %s2797_s23   ;;  %s1990_s22 = sphi %s2058_s22, %s2796_s22   ;;  %s1986_s21 = sphi %s2056_s21, %s2795_s21   ;;  %s1982_s20 = sphi %s2054_s20, %s2794_s20   ;;  %s1978_s19 = sphi %s2052_s19, %s2793_s19   ;;  %s1974_s18 = sphi %s2050_s18, %s2792_s18  }
  0x12   : > { %2761 = sst [smem:[#allocation14_spill]] %s1998_s24  ;;  %p50_p0 = scmp.ne.s32.totalorder %s1994_s23, %s1990_s22 }
  0x13   : > { %2762 = sst [smem:[#allocation15_spill]] %s2002_s25  ;;  %p51_p1 = scmp.eq.s32.totalorder %s2014_s28, 0 }
  0x14   : > { %p56_p2 = scmp.ne.s32.totalorder %s1990_s22, %s1986_s21  ;;  %p57_p3 = scmp.eq.s32.totalorder %s2104_s29, 0 }
  0x15   : > { %p52_p4 = por %p51_p1, %p50_p0  ;;  %p1602_p5 = scmp.lt.s32.totalorder %s2014_s28, 4 }
  0x16   : > { %p2118_p6 = por %p57_p3, %p56_p2  ;;  %s210_s8 = sand.u32 1, %s1994_s23  }
  0x17   : > { %s1557_s9 = sshll.u32 %s210_s8, 8  ;;  %s1578_s10 = sshll.u32 %s2010_s27, 8 }
  0x18   : > { %p2126_p7 = pnand %p1602_p5, %p52_p4  ;;  %s232_s12 = sand.u32 1, %s2014_s28  }
  0x19   : > { %s2765_s1 = sld [smem:[#allocation22_spill]]  ;;  %s236_s17 = scalar_lea.vmem [#allocation5], %s1557_s9 }
  0x1a   : > { %s244_s21 = sshll.u32 %s236_s17, 4  ;;  %s2134_s6 = scalar_lea.sflag [#allocation6], %s232_s12  ;;  %s245_s21 = int_to_ptr.vmem [resolvable:$true] %s244_s21 }
  0x1b   : > { %s2744_s30 = smov 128   ;;  %s2746_s5 = smov 8  }
  0x1c   : > { %p1567_p8 = scmp.ge.s32.totalorder %s2014_s28, 1  ;;  %p276_p9 = scmp.lt.s32.totalorder %s2014_s28, 5 }
  0x1d   : > { %s2767_s0 = sld [smem:[#allocation21_spill]]  ;;  %s1554_s25 = sadd.s32 4294967294, %s2014_s28  }
  0x1e   : > { %p2144_p10 = pnand %p1567_p8, %p276_p9  ;;  %s33_s12 = sadd.s32 1, %s2006_s26 }
  0x1f   : > { %s241_s15 = scalar_lea.hbm %s2765_s1, %s1578_s10  ;;  %s2768_s1 = smov 128  }
  0x20   : > { %s242_s16 = sshll.u32 %s241_s15, 4  ;;  %p34_p11 = scmp.ge.s32.totalorder %s33_s12, 2  ;;  %s243_s16 = int_to_ptr.hbm [resolvable:$true] %s242_s16 }
  0x21   : > { %1594 = dma.hbm_to_vmem [thread:$0]  (!%p2126_p7), %s243_s16, 4096, %s245_s21, %s2134_s6, %s2744_s30, %s2744_s30, %s2746_s5  }
  0x22   : > { %s214_s16 = scalar_lea.vmem [#allocation2], %s1557_s9  ;;  %s211_s30 = scalar_lea.sflag [#allocation3], %s210_s8 }
  0x23   : > { %s219_s15 = scalar_lea.hbm %s2767_s0, %s1578_s10  ;;  %s222_s21 = sshll.u32 %s214_s16, 4  ;;  %s223_s21 = int_to_ptr.vmem [resolvable:$true] %s222_s21 }
  0x24   : > { %s220_s17 = sshll.u32 %s219_s15, 4  ;;  %s97_s10 = sadd.s32 1, %s1982_s20  ;;  %s221_s17 = int_to_ptr.hbm [resolvable:$true] %s220_s17 }
  0x25   : > { %1591 = dma.hbm_to_vmem [thread:$0]  (!%p2126_p7), %s221_s17, 4096, %s223_s21, %s211_s30, %s2768_s1, %s2768_s1, %s2746_s5  }
  0x26   : > { %p104_p12 = scmp.ne.s32.totalorder %s1982_s20, %s1978_s19  ;;  %p110_p13 = scmp.ne.s32.totalorder %s1978_s19, %s1974_s18 }
  0x27   : > { %s2803_s12 = smov (%p34_p11, %s33_s12), 0  ;;  %s2770_s9 = sadd.s32 1, %s2010_s27 }
  0x28   : > { %2769 = sst [smem:[#allocation16_spill]] %s2803_s12  ;;  %s2805_s9 = smov (!%p34_p11, %s2770_s9), %s2010_s27 }
  0x29   : > { %s93_s8 = ssub.s32 %s2006_s26, %s2803_s12  ;;  %p2172_p0 = por %p104_p12, %p51_p1 }
  0x2a   : > { %p38_p2 = scmp.ge.s32.totalorder %s2805_s9, 2  ;;  %p2178_p4 = por %p110_p13, %p57_p3 }
  0x2b   : > { %p178_p7 = scmp.eq.s32.totalorder %s2104_s29, 3  ;;  %p184_p8 = scmp.eq.s32.totalorder %s1554_s25, 3 }
  0x2c   : > { %s2772_s11 = scalar_select %p2178_p4, 1, 0 }
  0x2d   : > { %s2807_s9 = smov (%p38_p2, %s2805_s9), 0  ;;  %p2185_p9 = por %p178_p7, %p104_p12 }
  0x2e   : > { %2773 = sst [smem:[#allocation17_spill]] %s2772_s11  ;;  %p2189_p1 = por %p184_p8, %p110_p13 }
  0x2f   : > { %2774 = sst [smem:[#allocation18_spill]] %s2807_s9  ;;  %s40_s17 = ssub.s32 %s2010_s27, %s2807_s9 }
  0x30   : > { %s2775_s14 = scalar_select %p2185_p9, 1, 0 }
  0x31   : > { %s2777_s15 = scalar_select %p2189_p1, 1, 0 }
  0x32   : > { %2776 = sst [smem:[#allocation19_spill]] %s2775_s14  ;;  %s256_s16 = sand.u32 1, %s1982_s20  }
  0x33   : > { %2778 = sst [smem:[#allocation20_spill]] %s2777_s15  ;;  %p41_p3 = scmp.eq.s32.totalorder %s40_s17, 0 }
  0x34   : > { %s94_s21 = sor.u32 %s93_s8, %s40_s17  ;;  %s1563_s25 = sshll.u32 %s256_s16, 7 }
  0x35   : > { %p95_p11 = scmp.eq.s32.totalorder %s94_s21, 0  ;;  %s2779_s5 = sadd.s32 1, %s1994_s23 }
  0x36   : > { %s2199_s0 = scalar_select %p41_p3, %s1994_s23, %s2779_s5  }
  0x37   : > { %s2202_s12 = scalar_select %p95_p11, %s1982_s20, %s97_s10  }
  0x38   : > { %s1564_s18 = sshll.u32 %s2006_s26, 4  ;;  %s1565_s14 = sshll.u32 %s2010_s27, 5 }
  0x39   : > { %s258_s24 = scalar_lea.vmem [#allocation7], %s1563_s25  ;;  %s263_s3 = sadd.s32 %s1565_s14, %s1564_s18 }
  0x3a   : > { %s268_s4 = sshll.u32 %s258_s24, 4  ;;  %s1566_s11 = sshll.u32 %s263_s3, 3  ;;  %s269_s4 = int_to_ptr.vmem [resolvable:$true] %s268_s4 }
  0x3b   : > { %p1595_p12 = pnand %p1602_p5, %p2172_p0  ;;  %s265_s8 = scalar_lea.hbm %s2739_s2, %s1566_s11 }
  0x3c   : > { %s266_s17 = sshll.u32 %s265_s8, 4  ;;  %s2780_s5 = smov 8   ;;  %s267_s17 = int_to_ptr.hbm [resolvable:$true] %s266_s17 }
  0x3d   : > { %1597 = dma.hbm_to_vmem [thread:$0]  (!%p1595_p12), %s267_s17, 2048, %s269_s4, %s2134_s6, %s2768_s1, %s2768_s1, %s2780_s5  }
  0x3e   : > { %280 = sbr.rel (%p2144_p10) target bundleno = 774 (0x306), region = 40  ;;  %s282_s3 = sand.u32 (!%p2144_p10), 1, %s1990_s22  }
  0x3f   : > { %s1568_s18 = sshll.u32 (!%p2144_p10), %s282_s3, 8  ;;  %s283_s24 = scalar_lea.sflag (!%p2144_p10), [#allocation3], %s282_s3 }
  0x40   : > { %s2220_s10 = scalar_lea.vmem (!%p2144_p10), [#allocation2], %s1568_s18 }
  0x43   : > { %1957 = dma.done.wait (%p2118_p6), %s283_s24, 4096  }
  0x44   : > { %1959 = vsyncadd (%p2118_p6), %s283_s24, 4294963200  ;;  %s292_s9 = sand.u32 1, %s2104_s29   ;;  %s2227_s1 = scalar_lea.vmem [#allocation5], %s1568_s18 }
  0x45   : > { %s293_s30 = scalar_lea.sflag [#allocation6], %s292_s9 }
  0x46   : > { %1961 = dma.done.wait (%p2118_p6), %s293_s30, 4096  }
  0x47   : > { %1963 = vsyncadd (%p2118_p6), %s293_s30, 4294963200  ;;  %s304_s6 = sand.u32 1, %s1978_s19  }
  0x48   : > { %s2236_s13 = sshll.u32 %s304_s6, 7 }
  0x49   : > { %s2239_s11 = scalar_lea.vmem [#allocation7], %s2236_s13 }
  0x4a   : > { %1965 = dma.done.wait (%p2178_p4), %s293_s30, 2048  }
  0x4b   : > { %1967 = vsyncadd (%p2178_p4), %s293_s30, 4294965248  ;;  %v362_v0 = vld [vmem:[%s2220_s10 + $0x78] sm:$0xff]  ;;  %s2782_s14 = sld [smem:[#allocation23_spill]]  ;;  %v347_v3 = vld [vmem:[%s2220_s10] sm:$0xff]  ;;  %s2649_s25 = scalar_lea.vmem [#allocation8], %s2236_s13 }
  0x4c   : > { %v378_v2 = vld [vmem:[%s2220_s10 + $0xf8] sm:$0xff]  ;;  %v361_v4 = vld [vmem:[%s2220_s10 + $0x70] sm:$0xff]  ;;  %v348_v12 = vld [vmem:[%s2220_s10 + $0x8] sm:$0xff]  ;;  %s2783_s21 = sld [smem:[#allocation24_spill]]  ;;  %s1417_s13 = sshll.u32 %s2649_s25, 4  ;;  %s1418_s13 = int_to_ptr.vmem [resolvable:$true] %s1417_s13 }
  0x4d   : > { %v377_v8 = vld [vmem:[%s2220_s10 + $0xf0] sm:$0xff]  ;;  %v363_v13 = vld [vmem:[%s2220_s10 + $0x80] sm:$0xff]  ;;  %v360_v19 = vld [vmem:[%s2220_s10 + $0x68] sm:$0xff]  ;;  %s2784_s8 = sld [smem:[#allocation14_spill]]  ;;  %s1403_s29 = scalar_lea.sflag [#allocation4], %s304_s6 }
  0x4e   : > { %v349_v9 = vld [vmem:[%s2220_s10 + $0x10] sm:$0xff]  ;;  %v376_v20 = vld [vmem:[%s2220_s10 + $0xe8] sm:$0xff]  ;;  %v359_v27 = vld [vmem:[%s2220_s10 + $0x60] sm:$0xff]  ;;  %s2785_s17 = sld [smem:[#allocation15_spill]] }
  0x4f   : > { %v365_v17 = vld [vmem:[%s2220_s10 + $0x90] sm:$0xff]  ;;  %v364_v23 = vld [vmem:[%s2220_s10 + $0x88] sm:$0xff]  ;;  %v375_v28 = vld [vmem:[%s2220_s10 + $0xe0] sm:$0xff]  ;;  %s2786_s30 = sld [smem:[#allocation25_spill]] }
  0x50   : > { %v350_v32 = vld [vmem:[%s2220_s10 + $0x18] sm:$0xff]  ;;  %v351_v35 = vld [vmem:[%s2220_s10 + $0x20] sm:$0xff]  ;;  %v357_v44 = vld [vmem:[%s2220_s10 + $0x50] sm:$0xff] }
  0x51   : > { %v2249_v1 = vld [vmem:[%s2782_s14] ss:$0 sm:$0xff]  ;;  %v358_v36 = vld [vmem:[%s2220_s10 + $0x58] sm:$0xff]  ;;  %v373_v45 = vld [vmem:[%s2220_s10 + $0xd0] sm:$0xff] }
  0x52   : > { %v2255_v5 = vmul.f32 %v2249_v1, %v362_v0  ;;  %v2258_v6 = vmul.f32 %v2249_v1, %v378_v2  ;;  %v2261_v7 = vmul.f32 %v2249_v1, %v347_v3  ;;  %v2266_v10 = vmul.f32 %v2249_v1, %v361_v4  ;;  %v374_v37 = vld [vmem:[%s2220_s10 + $0xd8] sm:$0xff]  ;;  %v367_v49 = vld [vmem:[%s2220_s10 + $0xa0] sm:$0xff]  ;;  %v368_v52 = vld [vmem:[%s2220_s10 + $0xa8] sm:$0xff] }
  0x53   : > { %v2269_v11 = vmul.f32 %v2249_v1, %v349_v9  ;;  %v2278_v15 = vmul.f32 %v2249_v1, %v377_v8  ;;  %v2281_v16 = vmul.f32 %v2249_v1, %v348_v12  ;;  %v2291_v22 = vmul.f32 %v2249_v1, %v363_v13  ;;  %v366_v40 = vld [vmem:[%s2220_s10 + $0x98] sm:$0xff]  ;;  %v356_v53 = vld [vmem:[%s2220_s10 + $0x48] sm:$0xff]  ;;  %v355_v61 = vld [vmem:[%s2220_s10 + $0x40] sm:$0xff]  ;;  %s1573_s5 = sshll.u32 %s2784_s8, 4 }
  0x54   : > { %478 = vmatpush.xpose.msra.mxu0 %v2255_v5  ;;  %543 = vmatpush.xpose.msra.mxu1 %v2258_v6  ;;  %v608_v14 = vmul.f32 %v2261_v7, %v2261_v7  ;;  %v2295_v24 = vmul.f32 %v2249_v1, %v365_v17  ;;  %v2300_v25 = vmul.f32 %v2249_v1, %v360_v19  ;;  %v372_v54 = vld [vmem:[%s2220_s10 + $0xc8] sm:$0xff]  ;;  %v371_v62 = vld [vmem:[%s2220_s10 + $0xc0] sm:$0xff]  ;;  %v353_v3 = vld [vmem:[%s2220_s10 + $0x30] sm:$0xff]  ;;  %s1574_s3 = sshll.u32 %s2785_s17, 5 }
  0x55   : > { %v610_v18 = vmul.f32 %v2269_v11, %v2269_v11  ;;  %v609_v21 = vmul.f32 %v2281_v16, %v2281_v16  ;;  %v2303_v26 = vmul.f32 %v2249_v1, %v376_v20  ;;  %v2308_v29 = vmul.f32 %v2249_v1, %v364_v23  ;;  %v352_v57 = vld [vmem:[%s2220_s10 + $0x28] sm:$0xff]  ;;  %v354_v9 = vld [vmem:[%s2220_s10 + $0x38] sm:$0xff]  ;;  %v369_v19 = vld [vmem:[%s2220_s10 + $0xb0] sm:$0xff]  ;;  %s1414_s18 = sadd.s32 %s1574_s3, %s1573_s5 }
  0x56   : > { %640 = vadd.xlane.f32.xlu0 %v608_v14  ;;  %v624_v30 = vmul.f32 %v2291_v22, %v2291_v22  ;;  %v626_v31 = vmul.f32 %v2295_v24, %v2295_v24  ;;  %v2318_v33 = vmul.f32 %v2249_v1, %v359_v27  ;;  %v2321_v34 = vmul.f32 %v2249_v1, %v375_v28  ;;  %v370_v12 = vld [vmem:[%s2220_s10 + $0xb8] sm:$0xff]  ;;  %s1575_s24 = sshll.u32 %s1414_s18, 3 }
  0x57   : > { %644 = vadd.xlane.f32.xlu2 %v610_v18  ;;  %642 = vadd.xlane.f32.xlu1 %v609_v21  ;;  %v625_v38 = vmul.f32 %v2308_v29, %v2308_v29  ;;  %v2329_v39 = vmul.f32 %v2249_v1, %v350_v32  ;;  %v2333_v41 = vmul.f32 %v2249_v1, %v351_v35 }
  0x58   : > { %479 = vmatpush.xpose.msra.mxu0 %v2266_v10  ;;  %544 = vmatpush.xpose.msra.mxu1 %v2278_v15  ;;  %v2338_v42 = vmul.f32 %v2249_v1, %v358_v36  ;;  %v2341_v43 = vmul.f32 %v2249_v1, %v374_v37  ;;  %v2346_v46 = vmul.f32 %v2249_v1, %v366_v40 }
  0x59   : > { %v611_v47 = vmul.f32 %v2329_v39, %v2329_v39  ;;  %v612_v48 = vmul.f32 %v2333_v41, %v2333_v41  ;;  %v392_v50 = vmul.f32 %v2249_v1, %v357_v44  ;;  %v2357_v51 = vmul.f32 %v2249_v1, %v373_v45  ;;  %v418_v44 = vld [vmem:[%s2239_s11 + $0x20] sm:$0xff] }
  0x5a   : > { %v627_v55 = vmul.f32 %v2346_v46, %v2346_v46  ;;  %v402_v56 = vmul.f32 %v2249_v1, %v367_v49  ;;  %v403_v58 = vmul.f32 %v2249_v1, %v368_v52  ;;  %v391_v59 = vmul.f32 %v2249_v1, %v356_v53  ;;  %v421_v49 = vld [vmem:[%s2239_s11 + $0x38] sm:$0xff] }
  0x5b   : > { %v407_v60 = vmul.f32 %v2249_v1, %v372_v54  ;;  %v387_v63 = vmul.f32 %v2249_v1, %v352_v57  ;;  %v390_v4 = vmul.f32 %v2249_v1, %v355_v61  ;;  %v406_v8 = vmul.f32 %v2249_v1, %v371_v62 }
  0x5c   : > { %480 = vmatpush.xpose.msra.mxu0 %v2300_v25  ;;  %545 = vmatpush.xpose.msra.mxu1 %v2303_v26  ;;  %v628_v0 = vmul.f32 %v402_v56, %v402_v56  ;;  %v629_v2 = vmul.f32 %v403_v58, %v403_v58  ;;  %v388_v14 = vmul.f32 %v2249_v1, %v353_v3 }
  0x5d   : > { %v613_v13 = vmul.f32 %v387_v63, %v387_v63  ;;  %v389_v17 = vmul.f32 %v2249_v1, %v354_v9  ;;  %v405_v18 = vmul.f32 %v2249_v1, %v370_v12  ;;  %v404_v21 = vmul.f32 %v2249_v1, %v369_v19  ;;  %v428_v19 = vld [vmem:[%s2239_s11 + $0x70] sm:$0xff] }
  0x5e   : > { %672 = vadd.xlane.f32.xlu0 %v624_v30  ;;  %v614_v20 = vmul.f32 %v388_v14, %v388_v14  ;;  %v632_v30 = vmul.f32 %v406_v8, %v406_v8  ;;  %v617_v32 = vmul.f32 %v391_v59, %v391_v59  ;;  %v618_v35 = vmul.f32 %v392_v50, %v392_v50 }
  0x5f   : > { %676 = vadd.xlane.f32.xlu2 %v626_v31  ;;  %674 = vadd.xlane.f32.xlu1 %v625_v38  ;;  %v615_v23 = vmul.f32 %v389_v17, %v389_v17  ;;  %v630_v27 = vmul.f32 %v404_v21, %v404_v21  ;;  %v631_v28 = vmul.f32 %v405_v18, %v405_v18 }
  0x60   : > { %481 = vmatpush.xpose.msra.mxu0 %v2318_v33  ;;  %546 = vmatpush.xpose.msra.mxu1 %v2321_v34  ;;  %v616_v31 = vmul.f32 %v390_v4, %v390_v4  ;;  %v633_v36 = vmul.f32 %v407_v60, %v407_v60  ;;  %v634_v37 = vmul.f32 %v2357_v51, %v2357_v51 }
  0x61   : > { %v635_v38 = vmul.f32 %v2341_v43, %v2341_v43  ;;  %v619_v40 = vmul.f32 %v2338_v42, %v2338_v42  ;;  %v434_v45 = vmul.f32 %v2249_v1, %v418_v44 }
  0x64   : > { %482 = vmatpush.xpose.msra.mxu0 %v2338_v42  ;;  %547 = vmatpush.xpose.msra.mxu1 %v2341_v43  ;;  %v416_v42 = vld [vmem:[%s2239_s11 + $0x10] sm:$0xff]  ;;  %v623_v43 = vmul.f32 %v2255_v5, %v2255_v5  ;;  %v639_v5 = vmul.f32 %v2258_v6, %v2258_v6  ;;  %v422_v6 = vld [vmem:[%s2239_s11 + $0x40] sm:$0xff] }
  0x65   : > { %v438_v53 = vmul.f32 %v2249_v1, %v422_v6 }
  0x66   : > { %646 = vadd.xlane.f32.xlu0 %v611_v47  ;;  %v420_v47 = vld [vmem:[%s2239_s11 + $0x30] sm:$0xff] }
  0x67   : > { %648 = vadd.xlane.f32.xlu2 %v612_v48  ;;  %678 = vadd.xlane.f32.xlu1 %v627_v55  ;;  %v436_v48 = vmul.f32 %v2249_v1, %v420_v47 }
  0x68   : > { %483 = vmatpush.xpose.msra.mxu0 %v392_v50  ;;  %548 = vmatpush.xpose.msra.mxu1 %v2357_v51  ;;  %v437_v50 = vmul.f32 %v2249_v1, %v421_v49 }
  0x6c   : > { %484 = vmatpush.xpose.msra.mxu0 %v391_v59  ;;  %549 = vmatpush.xpose.msra.mxu1 %v407_v60  ;;  %v424_v59 = vld [vmem:[%s2239_s11 + $0x50] sm:$0xff] }
  0x6d   : > { %v440_v61 = vmul.f32 %v2249_v1, %v424_v59 }
  0x6e   : > { %680 = vadd.xlane.f32.xlu0 %v628_v0 }
  0x6f   : > { %682 = vadd.xlane.f32.xlu2 %v629_v2  ;;  %650 = vadd.xlane.f32.xlu1 %v613_v13  ;;  %v427_v13 = vld [vmem:[%s2239_s11 + $0x68] sm:$0xff] }
  0x70   : > { %485 = vmatpush.xpose.msra.mxu0 %v390_v4  ;;  %550 = vmatpush.xpose.msra.mxu1 %v406_v8  ;;  %v426_v4 = vld [vmem:[%s2239_s11 + $0x60] sm:$0xff] }
  0x71   : > { %v442_v12 = vmul.f32 %v2249_v1, %v426_v4 }
  0x74   : > { %486 = vmatpush.xpose.msra.mxu0 %v389_v17  ;;  %551 = vmatpush.xpose.msra.mxu1 %v405_v18  ;;  %v443_v17 = vmul.f32 %v2249_v1, %v427_v13 }
  0x76   : > { %652 = vadd.xlane.f32.xlu0 %v614_v20 }
  0x77   : > { %654 = vadd.xlane.f32.xlu2 %v615_v23  ;;  %684 = vadd.xlane.f32.xlu1 %v630_v27  ;;  %v429_v27 = vld [vmem:[%s2239_s11 + $0x78] sm:$0xff] }
  0x78   : > { %487 = vmatpush.xpose.msra.mxu0 %v388_v14  ;;  %552 = vmatpush.xpose.msra.mxu1 %v404_v21  ;;  %v444_v21 = vmul.f32 %v2249_v1, %v428_v19 }
  0x7c   : > { %488 = vmatpush.xpose.msra.mxu0 %v387_v63  ;;  %553 = vmatpush.xpose.msra.mxu1 %v403_v58  ;;  %v425_v63 = vld [vmem:[%s2239_s11 + $0x58] sm:$0xff] }
  0x7d   : > { %v441_v3 = vmul.f32 %v2249_v1, %v425_v63 }
  0x7e   : > { %686 = vadd.xlane.f32.xlu0 %v631_v28 }
  0x7f   : > { %688 = vadd.xlane.f32.xlu2 %v632_v30  ;;  %656 = vadd.xlane.f32.xlu1 %v616_v31  ;;  %v445_v31 = vmul.f32 %v2249_v1, %v429_v27 }
  0x80   : > { %489 = vmatpush.xpose.msra.mxu0 %v2333_v41  ;;  %554 = vmatpush.xpose.msra.mxu1 %v402_v56  ;;  %v423_v56 = vld [vmem:[%s2239_s11 + $0x48] sm:$0xff] }
  0x81   : > { %v439_v58 = vmul.f32 %v2249_v1, %v423_v56 }
  0x84   : > { %490 = vmatpush.xpose.msra.mxu0 %v2329_v39  ;;  %555 = vmatpush.xpose.msra.mxu1 %v2346_v46  ;;  %v414_v39 = vld [vmem:[%s2239_s11] sm:$0xff]  ;;  %v419_v46 = vld [vmem:[%s2239_s11 + $0x28] sm:$0xff] }
  0x86   : > { %658 = vadd.xlane.f32.xlu0 %v617_v32 }
  0x87   : > { %660 = vadd.xlane.f32.xlu2 %v618_v35  ;;  %690 = vadd.xlane.f32.xlu1 %v633_v36 }
  0x88   : > { %491 = vmatpush.xpose.msra.mxu0 %v2269_v11  ;;  %556 = vmatpush.xpose.msra.mxu1 %v2295_v24  ;;  %v430_v11 = vmul.f32 %v2249_v1, %v414_v39  ;;  %v620_v24 = vmul.f32 %v2318_v33, %v2318_v33  ;;  %v636_v33 = vmul.f32 %v2321_v34, %v2321_v34 }
  0x8c   : > { %492 = vmatpush.xpose.msra.mxu0 %v2281_v16  ;;  %557 = vmatpush.xpose.msra.mxu1 %v2308_v29  ;;  %v621_v16 = vmul.f32 %v2300_v25, %v2300_v25  ;;  %v415_v29 = vld [vmem:[%s2239_s11 + $0x8] sm:$0xff]  ;;  %v432_v25 = vmul.f32 %v2249_v1, %v416_v42 }
  0x8d   : > { %v431_v41 = vmul.f32 %v2249_v1, %v415_v29 }
  0x8e   : > { %692 = vadd.xlane.f32.xlu0 %v634_v37 }
  0x8f   : > { %694 = vadd.xlane.f32.xlu2 %v635_v38  ;;  %662 = vadd.xlane.f32.xlu1 %v619_v40 }
  0x90   : > { %493 = vmatpush.xpose.msra.mxu0 %v2261_v7  ;;  %558 = vmatpush.xpose.msra.mxu1 %v2291_v22  ;;  %v637_v7 = vmul.f32 %v2303_v26, %v2303_v26  ;;  %v638_v22 = vmul.f32 %v2278_v15, %v2278_v15  ;;  %v622_v26 = vmul.f32 %v2266_v10, %v2266_v10  ;;  %v417_v15 = vld [vmem:[%s2239_s11 + $0x18] sm:$0xff] }
  0x91   : > { %v433_v34 = vmul.f32 %v2249_v1, %v417_v15  ;;  %v435_v10 = vmul.f32 %v2249_v1, %v419_v46 }
  0x93   : > { %494 = vmatmul.f32.vlgmr.msra.gmra.mxu0 %v430_v11  ;;  %559 = vmatmul.f32.vlgmr.msra.gmra.mxu1 %v430_v11 }
  0x96   : > { %664 = vadd.xlane.f32.xlu0 %v620_v24 }
  0x97   : > { %666 = vadd.xlane.f32.xlu2 %v621_v16  ;;  %696 = vadd.xlane.f32.xlu1 %v636_v33 }
  0x9b   : > { %497 = vmatmul.f32.gmra.mxu0 %v431_v41  ;;  %562 = vmatmul.f32.gmra.mxu1 %v431_v41 }
  0x9e   : > { %698 = vadd.xlane.f32.xlu0 %v637_v7 }
  0x9f   : > { %700 = vadd.xlane.f32.xlu2 %v638_v22  ;;  %668 = vadd.xlane.f32.xlu1 %v622_v26 }
  0xa3   : > { %500 = vmatmul.f32.gmra.mxu0 %v432_v25  ;;  %565 = vmatmul.f32.gmra.mxu1 %v432_v25 }
  0xa6   : > { %670 = vadd.xlane.f32.xlu0 %v623_v43 }
  0xa7   : > { %702 = vadd.xlane.f32.xlu1 %v639_v5 }
  0xab   : > { %503 = vmatmul.f32.gmra.mxu0 %v433_v34  ;;  %568 = vmatmul.f32.gmra.mxu1 %v433_v34 }
  0xb3   : > { %506 = vmatmul.f32.gmra.mxu0 %v434_v45  ;;  %571 = vmatmul.f32.gmra.mxu1 %v434_v45 }
  0xbb   : > { %509 = vmatmul.f32.gmra.mxu0 %v435_v10  ;;  %574 = vmatmul.f32.gmra.mxu1 %v435_v10 }
  0xc3   : > { %512 = vmatmul.f32.gmra.mxu0 %v436_v48  ;;  %577 = vmatmul.f32.gmra.mxu1 %v436_v48 }
  0xc9   : > { %v641_v51 = vpop.xlane.xlu0 %640 }
  0xca   : > { %704 = vxpose.xlu2.b32.start [1/16] (narrow) %v641_v51, 8  ;;  %v643_v52 = vpop.xlane.xlu1 %642  ;;  %v645_v55 = vpop.xlane.xlu2 %644 }
  0xcb   : > { %515 = vmatmul.f32.gmra.mxu0 %v437_v50  ;;  %580 = vmatmul.f32.gmra.mxu1 %v437_v50 }
  0xd1   : > { %v673_v54 = vpop.xlane.xlu0 %672 }
  0xd2   : > { %705 = vxpose.xlu2.b32.cont [2/16] (narrow) %v643_v52, 8  ;;  %736 = vxpose.xlu0.b32.start [1/16] (narrow) %v673_v54, 8  ;;  %v675_v57 = vpop.xlane.xlu1 %674  ;;  %v677_v60 = vpop.xlane.xlu2 %676 }
  0xd3   : > { %518 = vmatmul.f32.gmra.mxu0 %v438_v53  ;;  %583 = vmatmul.f32.gmra.mxu1 %v438_v53 }
  0xd9   : > { %v647_v62 = vpop.xlane.xlu0 %646 }
  0xda   : > { %706 = vxpose.xlu2.b32.cont [3/16] (narrow) %v645_v55, 8  ;;  %737 = vxpose.xlu0.b32.cont [2/16] (narrow) %v675_v57, 8  ;;  %v679_v0 = vpop.xlane.xlu1 %678  ;;  %v649_v2 = vpop.xlane.xlu2 %648 }
  0xdb   : > { %521 = vmatmul.f32.gmra.mxu0 %v439_v58  ;;  %586 = vmatmul.f32.gmra.mxu1 %v439_v58 }
  0xe1   : > { %v681_v8 = vpop.xlane.xlu0 %680 }
  0xe2   : > { %738 = vxpose.xlu0.b32.cont [3/16] (narrow) %v677_v60, 8  ;;  %707 = vxpose.xlu2.b32.cont [4/16] (narrow) %v647_v62, 8  ;;  %v651_v9 = vpop.xlane.xlu1 %650  ;;  %v683_v14 = vpop.xlane.xlu2 %682 }
  0xe3   : > { %524 = vmatmul.f32.gmra.mxu0 %v440_v61  ;;  %589 = vmatmul.f32.gmra.mxu1 %v440_v61 }
  0xe9   : > { %v653_v18 = vpop.xlane.xlu0 %652 }
  0xea   : > { %739 = vxpose.xlu0.b32.cont [4/16] (narrow) %v679_v0, 8  ;;  %708 = vxpose.xlu2.b32.cont [5/16] (narrow) %v649_v2, 8  ;;  %v685_v20 = vpop.xlane.xlu1 %684  ;;  %v655_v23 = vpop.xlane.xlu2 %654 }
  0xeb   : > { %527 = vmatmul.f32.gmra.mxu0 %v441_v3  ;;  %592 = vmatmul.f32.gmra.mxu1 %v441_v3 }
  0xf1   : > { %v687_v28 = vpop.xlane.xlu0 %686 }
  0xf2   : > { %709 = vxpose.xlu2.b32.cont [6/16] (narrow) %v651_v9, 8  ;;  %740 = vxpose.xlu0.b32.cont [5/16] (narrow) %v681_v8, 8  ;;  %v657_v30 = vpop.xlane.xlu1 %656  ;;  %v689_v32 = vpop.xlane.xlu2 %688 }
  0xf3   : > { %530 = vmatmul.f32.gmra.mxu0 %v442_v12  ;;  %595 = vmatmul.f32.gmra.mxu1 %v442_v12 }
  0xf9   : > { %v659_v35 = vpop.xlane.xlu0 %658 }
  0xfa   : > { %741 = vxpose.xlu0.b32.cont [6/16] (narrow) %v683_v14, 8  ;;  %710 = vxpose.xlu2.b32.cont [7/16] (narrow) %v653_v18, 8  ;;  %v691_v36 = vpop.xlane.xlu1 %690  ;;  %v661_v37 = vpop.xlane.xlu2 %660 }
  0xfb   : > { %533 = vmatmul.f32.gmra.mxu0 %v443_v17  ;;  %598 = vmatmul.f32.gmra.mxu1 %v443_v17 }
 0x101   : > { %v693_v38 = vpop.xlane.xlu0 %692 }
 0x102   : > { %742 = vxpose.xlu0.b32.cont [7/16] (narrow) %v685_v20, 8  ;;  %711 = vxpose.xlu2.b32.cont [8/16] (narrow) %v655_v23, 8  ;;  %v663_v39 = vpop.xlane.xlu1 %662  ;;  %v695_v40 = vpop.xlane.xlu2 %694 }
 0x103   : > { %536 = vmatmul.f32.gmra.mxu0 %v444_v21  ;;  %601 = vmatmul.f32.gmra.mxu1 %v444_v21 }
 0x109   : > { %v665_v11 = vpop.xlane.xlu0 %664 }
 0x10a   : > { %712 = vxpose.xlu2.b32.cont [9/16] (narrow) %v657_v30, 8  ;;  %743 = vxpose.xlu0.b32.cont [8/16] (narrow) %v687_v28, 8  ;;  %v697_v1 = vpop.xlane.xlu1 %696  ;;  %v667_v24 = vpop.xlane.xlu2 %666 }
 0x10b   : > { %539 = vmatmul.f32.gmra.mxu0 %v445_v31  ;;  %604 = vmatmul.f32.gmra.mxu1 %v445_v31 }
 0x110   : > { %v495_v33 = vpop.f32.mrf.mxu0  ;;  %v560_v42 = vpop.f32.mrf.mxu1 }
 0x111   : > { %v699_v16 = vpop.xlane.xlu0 %698 }
 0x112   : > { %744 = vxpose.xlu0.b32.cont [9/16] (narrow) %v689_v32, 8  ;;  %713 = vxpose.xlu2.b32.cont [10/16] (narrow) %v659_v35, 8  ;;  %v669_v29 = vpop.xlane.xlu1 %668  ;;  %v701_v7 = vpop.xlane.xlu2 %700  ;;  %v461_v35 = vld [vmem:[%s2227_s1 + $0x78] sm:$0xff] }
 0x113   : > { %996 = vmatpush.msra.mxu2 %v461_v35 }
 0x118   : > { %v498_v25 = vpop.f32.mrf.mxu0  ;;  %v563_v43 = vpop.f32.mrf.mxu1 }
 0x119   : > { %v671_v41 = vpop.xlane.xlu0 %670 }
 0x11a   : > { %745 = vxpose.xlu0.b32.cont [10/16] (narrow) %v691_v36, 8  ;;  %714 = vxpose.xlu2.b32.cont [11/16] (narrow) %v661_v37, 8  ;;  %v703_v22 = vpop.xlane.xlu1 %702  ;;  %v477_v36 = vld [vmem:[%s2227_s1 + $0xf8] sm:$0xff] }
 0x11b   : > { %1061 = vmatpush.msra.mxu3 %v477_v36 }
 0x120   : > { %v501_v26 = vpop.f32.mrf.mxu0  ;;  %v566_v15 = vpop.f32.mrf.mxu1 }
 0x122   : > { %715 = vxpose.xlu2.b32.cont [12/16] (narrow) %v663_v39, 8  ;;  %746 = vxpose.xlu0.b32.cont [11/16] (narrow) %v693_v38, 8 }
 0x128   : > { %v504_v45 = vpop.f32.mrf.mxu0  ;;  %v569_v46 = vpop.f32.mrf.mxu1 }
 0x12a   : > { %747 = vxpose.xlu0.b32.cont [12/16] (narrow) %v695_v40, 8  ;;  %716 = vxpose.xlu2.b32.cont [13/16] (narrow) %v665_v11, 8 }
 0x130   : > { %v507_v6 = vpop.f32.mrf.mxu0  ;;  %v572_v52 = vpop.f32.mrf.mxu1 }
 0x132   : > { %748 = vxpose.xlu0.b32.cont [13/16] (narrow) %v697_v1, 8  ;;  %717 = vxpose.xlu2.b32.cont [14/16] (narrow) %v667_v24, 8  ;;  %v460_v1 = vld [vmem:[%s2227_s1 + $0x70] sm:$0xff] }
 0x133   : > { %v476_v24 = vld [vmem:[%s2227_s1 + $0xf0] sm:$0xff]  ;;  %997 = vmatpush.msra.mxu2 %v460_v1  ;;  %v447_v1 = vld [vmem:[%s2227_s1 + $0x8] sm:$0xff] }
 0x134   : > { %1062 = vmatpush.msra.mxu3 %v476_v24  ;;  %v463_v24 = vld [vmem:[%s2227_s1 + $0x88] sm:$0xff] }
 0x138   : > { %v510_v58 = vpop.f32.mrf.mxu0  ;;  %v575_v59 = vpop.f32.mrf.mxu1 }
 0x13a   : > { %718 = vxpose.xlu2.b32.cont [15/16] (narrow) %v669_v29, 8  ;;  %749 = vxpose.xlu0.b32.cont [14/16] (narrow) %v699_v16, 8  ;;  %v459_v16 = vld [vmem:[%s2227_s1 + $0x68] sm:$0xff] }
 0x13b   : > { %v475_v29 = vld [vmem:[%s2227_s1 + $0xe8] sm:$0xff]  ;;  %998 = vmatpush.msra.mxu2 %v459_v16  ;;  %v446_v16 = vld [vmem:[%s2227_s1] sm:$0xff] }
 0x13c   : > { %1063 = vmatpush.msra.mxu3 %v475_v29  ;;  %v462_v29 = vld [vmem:[%s2227_s1 + $0x80] sm:$0xff] }
 0x140   : > { %v513_v63 = vpop.f32.mrf.mxu0  ;;  %v578_v0 = vpop.f32.mrf.mxu1 }
 0x142   : > { %750 = vxpose.xlu0.b32.cont [15/16] (narrow) %v701_v7, 8  ;;  %719 = vxpose.xlu2.b32.end [16/16] (narrow) %v671_v41, 8 }
 0x148   : > { %v516_v9 = vpop.f32.mrf.mxu0  ;;  %v581_v12 = vpop.f32.mrf.mxu1 }
 0x14a   : > { %751 = vxpose.xlu0.b32.end [16/16] (narrow) %v703_v22, 8  ;;  %v458_v22 = vld [vmem:[%s2227_s1 + $0x60] sm:$0xff] }
 0x14b   : > { %999 = vmatpush.msra.mxu2 %v458_v22 }
 0x150   : > { %v519_v18 = vpop.f32.mrf.mxu0  ;;  %v584_v19 = vpop.f32.mrf.mxu1 }
 0x158   : > { %v522_v30 = vpop.f32.mrf.mxu0  ;;  %v587_v31 = vpop.f32.mrf.mxu1 }
 0x160   : > { %v525_v39 = vpop.f32.mrf.mxu0  ;;  %v590_v40 = vpop.f32.mrf.mxu1 }
 0x163   : > { %v720_v34 = vpop.trf.xlu2 }
 0x164   : > { %v768_v44 = vmul.f32 0.5, %v720_v34  ;;  %v456_v34 = vld [vmem:[%s2227_s1 + $0x50] sm:$0xff] }
 0x166   : > { %v2446_v5 = vperm.slane %v768_v44, 0  ;;  %v472_v44 = vld [vmem:[%s2227_s1 + $0xd0] sm:$0xff] }
 0x168   : > { %v2451_v49 = vsub.f32 %v495_v33, %v2446_v5  ;;  %v2459_v53 = vsub.f32 %v498_v25, %v2446_v5  ;;  %v2467_v56 = vsub.f32 %v501_v26, %v2446_v5  ;;  %v2475_v61 = vsub.f32 %v504_v45, %v2446_v5  ;;  %v474_v33 = vld [vmem:[%s2227_s1 + $0xe0] sm:$0xff]  ;;  %v473_v25 = vld [vmem:[%s2227_s1 + $0xd8] sm:$0xff]  ;;  %v528_v26 = vpop.f32.mrf.mxu0  ;;  %v455_v45 = vld [vmem:[%s2227_s1 + $0x48] sm:$0xff] }
 0x169   : > { %v2483_v3 = vsub.f32 %v507_v6, %v2446_v5  ;;  %v2491_v13 = vsub.f32 %v510_v58, %v2446_v5  ;;  %v2499_v20 = vsub.f32 %v513_v63, %v2446_v5  ;;  %v2507_v27 = vsub.f32 %v516_v9, %v2446_v5  ;;  %1064 = vmatpush.msra.mxu3 %v474_v33  ;;  %v470_v6 = vld [vmem:[%s2227_s1 + $0xc0] sm:$0xff] }
 0x16a   : > { %v2517_v37 = vsub.f32 %v519_v18, %v2446_v5  ;;  %v2529_v41 = vsub.f32 %v522_v30, %v2446_v5  ;;  %v450_v18 = vld [vmem:[%s2227_s1 + $0x20] sm:$0xff] }
 0x16b   : > { %1065 = vmatpush.msra.mxu3 %v473_v25 }
 0x16d   : > { %1066 = vmatpush.msra.mxu3 %v472_v44 }
 0x170   : > { %v531_v63 = vpop.f32.mrf.mxu0 }
 0x176   : > { %v752_v10 = vpop.trf.xlu0 }
 0x177   : > { %v769_v47 = vmul.f32 0.5, %v752_v10  ;;  %v2545_v10 = vsub.f32 %v525_v39, %v2446_v5  ;;  %v448_v39 = vld [vmem:[%s2227_s1 + $0x10] sm:$0xff] }
 0x178   : > { %v534_v35 = vpop.f32.mrf.mxu0 }
 0x179   : > { %v2448_v48 = vperm.slane %v769_v47, 0  ;;  %v2587_v22 = vsub.f32 %v534_v35, %v2446_v5 }
 0x17b   : > { %v2454_v50 = vsub.f32 %v560_v42, %v2448_v48  ;;  %v2462_v54 = vsub.f32 %v563_v43, %v2448_v48  ;;  %v2470_v57 = vsub.f32 %v566_v15, %v2448_v48  ;;  %v2478_v62 = vsub.f32 %v569_v46, %v2448_v48  ;;  %v457_v42 = vld [vmem:[%s2227_s1 + $0x58] sm:$0xff]  ;;  %v593_v15 = vpop.f32.mrf.mxu1  ;;  %v471_v46 = vld [vmem:[%s2227_s1 + $0xc8] sm:$0xff] }
 0x17c   : > { %v2486_v4 = vsub.f32 %v572_v52, %v2448_v48  ;;  %v2494_v14 = vsub.f32 %v575_v59, %v2448_v48  ;;  %v2502_v21 = vsub.f32 %v578_v0, %v2448_v48  ;;  %v2510_v28 = vsub.f32 %v581_v12, %v2448_v48  ;;  %1000 = vmatpush.msra.mxu2 %v457_v42  ;;  %v453_v52 = vld [vmem:[%s2227_s1 + $0x38] sm:$0xff]  ;;  %v452_v59 = vld [vmem:[%s2227_s1 + $0x30] sm:$0xff]  ;;  %v451_v12 = vld [vmem:[%s2227_s1 + $0x28] sm:$0xff] }
 0x17d   : > { %v804_v51 = vmax.f32 %v2451_v49, %v2454_v50  ;;  %v807_v55 = vmax.f32 %v2459_v53, %v2462_v54  ;;  %v810_v60 = vmax.f32 %v2467_v56, %v2470_v57  ;;  %v813_v2 = vmax.f32 %v2475_v61, %v2478_v62  ;;  %1067 = vmatpush.msra.mxu3 %v471_v46 }
 0x17e   : > { %v816_v8 = vmax.f32 %v2483_v3, %v2486_v4  ;;  %v819_v17 = vmax.f32 %v2491_v13, %v2494_v14  ;;  %v822_v23 = vmax.f32 %v2499_v20, %v2502_v21  ;;  %v825_v32 = vmax.f32 %v2507_v27, %v2510_v28  ;;  %1001 = vmatpush.msra.mxu2 %v456_v34 }
 0x17f   : > { %805 = vmax.xlane.f32.xlu1 %v804_v51  ;;  %v2520_v38 = vsub.f32 %v584_v19, %v2448_v48  ;;  %v2532_v7 = vsub.f32 %v587_v31, %v2448_v48  ;;  %v2548_v47 = vsub.f32 %v590_v40, %v2448_v48  ;;  %v454_v51 = vld [vmem:[%s2227_s1 + $0x40] sm:$0xff]  ;;  %1068 = vmatpush.msra.mxu3 %v470_v6  ;;  %v449_v31 = vld [vmem:[%s2227_s1 + $0x18] sm:$0xff]  ;;  %v464_v40 = vld [vmem:[%s2227_s1 + $0x90] sm:$0xff] }
 0x180   : > { %1002 = vmatpush.msra.mxu2 %v455_v45  ;;  %v466_v19 = vld [vmem:[%s2227_s1 + $0xa0] sm:$0xff]  ;;  %v537_v42 = vpop.f32.mrf.mxu0 }
 0x181   : > { %v828_v11 = vmax.f32 %v2517_v37, %v2520_v38  ;;  %v831_v43 = vmax.f32 %v2529_v41, %v2532_v7  ;;  %v834_v58 = vmax.f32 %v2545_v10, %v2548_v47 }
 0x182   : > { %1003 = vmatpush.msra.mxu2 %v454_v51 }
 0x183   : > { %v596_v0 = vpop.f32.mrf.mxu1 }
 0x184   : > { %1004 = vmatpush.msra.mxu2 %v453_v52  ;;  %v2574_v30 = vsub.f32 %v596_v0, %v2448_v48 }
 0x186   : > { %1005 = vmatpush.msra.mxu2 %v452_v59 }
 0x187   : > { %808 = vmax.xlane.f32.xlu1 %v807_v55  ;;  %v469_v55 = vld [vmem:[%s2227_s1 + $0xb8] sm:$0xff] }
 0x188   : > { %1069 = vmatpush.msra.mxu3 %v469_v55  ;;  %1006 = vmatpush.msra.mxu2 %v451_v12  ;;  %v540_v44 = vpop.f32.mrf.mxu0 }
 0x189   : > { %v2603_v46 = vsub.f32 %v540_v44, %v2446_v5 }
 0x18a   : > { %1007 = vmatpush.msra.mxu2 %v450_v18 }
 0x18b   : > { %v599_v36 = vpop.f32.mrf.mxu1 }
 0x18c   : > { %1008 = vmatpush.msra.mxu2 %v449_v31  ;;  %v2590_v33 = vsub.f32 %v599_v36, %v2448_v48 }
 0x18e   : > { %1009 = vmatpush.msra.mxu2 %v448_v39 }
 0x18f   : > { %811 = vmax.xlane.f32.xlu1 %v810_v60  ;;  %v468_v60 = vld [vmem:[%s2227_s1 + $0xb0] sm:$0xff] }
 0x190   : > { %1070 = vmatpush.msra.mxu3 %v468_v60  ;;  %1010 = vmatpush.msra.mxu2 %v447_v1 }
 0x192   : > { %1011 = vmatpush.msra.mxu2 %v446_v16 }
 0x193   : > { %v602_v25 = vpop.f32.mrf.mxu1 }
 0x197   : > { %814 = vmax.xlane.f32.xlu1 %v813_v2  ;;  %v2559_v2 = vsub.f32 %v528_v26, %v2446_v5  ;;  %v2595_v26 = vsub.f32 %v537_v42, %v2446_v5 }
 0x19b   : > { %v605_v45 = vpop.f32.mrf.mxu1 }
 0x19c   : > { %v2606_v51 = vsub.f32 %v605_v45, %v2448_v48 }
 0x19e   : > { %v849_v60 = vmax.f32 %v2603_v46, %v2606_v51 }
 0x19f   : > { %817 = vmax.xlane.f32.xlu1 %v816_v8  ;;  %v2562_v8 = vsub.f32 %v593_v15, %v2448_v48  ;;  %v2598_v15 = vsub.f32 %v602_v25, %v2448_v48 }
 0x1a1   : > { %v837_v9 = vmax.f32 %v2559_v2, %v2562_v8  ;;  %v846_v34 = vmax.f32 %v2595_v26, %v2598_v15 }
 0x1a7   : > { %820 = vmax.xlane.f32.xlu1 %v819_v17  ;;  %v467_v17 = vld [vmem:[%s2227_s1 + $0xa8] sm:$0xff] }
 0x1a8   : > { %1071 = vmatpush.msra.mxu3 %v467_v17 }
 0x1aa   : > { %1072 = vmatpush.msra.mxu3 %v466_v19 }
 0x1af   : > { %823 = vmax.xlane.f32.xlu1 %v822_v23  ;;  %v2571_v23 = vsub.f32 %v531_v63, %v2446_v5 }
 0x1b7   : > { %826 = vmax.xlane.f32.xlu1 %v825_v32  ;;  %v465_v32 = vld [vmem:[%s2227_s1 + $0x98] sm:$0xff]  ;;  %s1416_s1 = scalar_lea.hbm %s2786_s30, %s1575_s24 }
 0x1b8   : > { %1073 = vmatpush.msra.mxu3 %v465_v32  ;;  %s1419_s11 = sshll.u32 %s1416_s1, 4  ;;  %s1420_s11 = int_to_ptr.hbm [resolvable:$true] %s1419_s11 }
 0x1b9   : > { %s1898_s7 = sshra.s32 %s1420_s11, 4  ;;  %s1899_s7 = int_to_ptr.hbm [resolvable:$true] %s1898_s7 }
 0x1ba   : > { %1074 = vmatpush.msra.mxu3 %v464_v40  ;;  %s1900_s14 = scalar_lea.hbm %s1899_s7, 128  ;;  %p1905_p13 = scmp.lt.s32.totalorder %s1899_s7, %s2786_s30 }
 0x1bb   : > { %p1901_p5 = scmp.ne.s32.totalorder %s1899_s7, %s1900_s14 }
 0x1bc   : > { %1075 = vmatpush.msra.mxu3 %v463_v24 }
 0x1bd   : > { %p1902_p6 = pnand %p1901_p5, %p2185_p9 }
 0x1be   : > { %1076 = vmatpush.msra.mxu3 %v462_v29 }
 0x1bf   : > { %829 = vmax.xlane.f32.xlu1 %v828_v11  ;;  %v840_v11 = vmax.f32 %v2571_v23, %v2574_v30  ;;  %p1903_p10 = pneg %p1902_p6 }
 0x1c7   : > { %832 = vmax.xlane.f32.xlu1 %v831_v43  ;;  %v843_v43 = vmax.f32 %v2587_v22, %v2590_v33 }
 0x1cf   : > { %835 = vmax.xlane.f32.xlu1 %v834_v58 }
 0x1d7   : > { %838 = vmax.xlane.f32.xlu1 %v837_v9 }
 0x1df   : > { %841 = vmax.xlane.f32.xlu1 %v840_v11 }
 0x1e7   : > { %844 = vmax.xlane.f32.xlu1 %v843_v43 }
 0x1ef   : > { %847 = vmax.xlane.f32.xlu1 %v846_v34 }
 0x1f2   : > { %v806_v6 = vpop.xlane.xlu1 %805 }
 0x1f3   : > { %v852_v52 = vsub.f32 %v2451_v49, %v806_v6  ;;  %v853_v55 = vsub.f32 %v2454_v50, %v806_v6 }
 0x1f5   : > { %v884_v58 = vmul.f32 1.442695, %v852_v52  ;;  %v886_v59 = vmul.f32 1.442695, %v853_v55 }
 0x1f7   : > { %1698 = vpow2.f32 %v884_v58  ;;  %850 = vmax.xlane.f32.xlu1 %v849_v60 }
 0x1f8   : > { %1700 = vpow2.f32 %v886_v59 }
 0x1fa   : > { %v809_v63 = vpop.xlane.xlu1 %808 }
 0x1fb   : > { %v854_v5 = vsub.f32 %v2459_v53, %v809_v63  ;;  %v855_v0 = vsub.f32 %v2462_v54, %v809_v63 }
 0x1fd   : > { %v1699_v48 = vpop.eup %1698  ;;  %v888_v9 = vmul.f32 1.442695, %v854_v5  ;;  %v890_v12 = vmul.f32 1.442695, %v855_v0 }
 0x1fe   : > { %v1701_v17 = vpop.eup %1700  ;;  %1012 = vmatmul.f32.vlgmr.msra.gmra.mxu2 %v1699_v48 }
 0x1ff   : > { %1702 = vpow2.f32 %v888_v9  ;;  %1077 = vmatmul.f32.vlgmr.msra.gmra.mxu3 %v1701_v17  ;;  %v948_v49 = vadd.f32 %v1701_v17, %v1699_v48 }
 0x200   : > { %1704 = vpow2.f32 %v890_v12 }
 0x201   : > { %949 = vadd.xlane.f32.xlu1 %v948_v49 }
 0x202   : > { %v812_v50 = vpop.xlane.xlu1 %811 }
 0x203   : > { %v856_v18 = vsub.f32 %v2467_v56, %v812_v50  ;;  %v857_v19 = vsub.f32 %v2470_v57, %v812_v50 }
 0x205   : > { %v1703_v31 = vpop.eup %1702  ;;  %v892_v32 = vmul.f32 1.442695, %v856_v18  ;;  %v894_v53 = vmul.f32 1.442695, %v857_v19 }
 0x206   : > { %v1705_v35 = vpop.eup %1704  ;;  %1015 = vmatmul.f32.gmra.mxu2 %v1703_v31 }
 0x207   : > { %1706 = vpow2.f32 %v892_v32  ;;  %1080 = vmatmul.f32.gmra.mxu3 %v1705_v35  ;;  %v951_v54 = vadd.f32 %v1705_v35, %v1703_v31 }
 0x208   : > { %1708 = vpow2.f32 %v894_v53 }
 0x209   : > { %952 = vadd.xlane.f32.xlu1 %v951_v54 }
 0x20a   : > { %v815_v36 = vpop.xlane.xlu1 %814 }
 0x20b   : > { %v858_v39 = vsub.f32 %v2475_v61, %v815_v36  ;;  %v859_v40 = vsub.f32 %v2478_v62, %v815_v36 }
 0x20d   : > { %v1707_v11 = vpop.eup %1706  ;;  %v896_v1 = vmul.f32 1.442695, %v858_v39  ;;  %v898_v56 = vmul.f32 1.442695, %v859_v40 }
 0x20e   : > { %v1709_v24 = vpop.eup %1708  ;;  %1018 = vmatmul.f32.gmra.mxu2 %v1707_v11 }
 0x20f   : > { %1710 = vpow2.f32 %v896_v1  ;;  %1083 = vmatmul.f32.gmra.mxu3 %v1709_v24  ;;  %v954_v57 = vadd.f32 %v1709_v24, %v1707_v11 }
 0x210   : > { %1712 = vpow2.f32 %v898_v56 }
 0x211   : > { %955 = vadd.xlane.f32.xlu1 %v954_v57 }
 0x212   : > { %v818_v16 = vpop.xlane.xlu1 %817 }
 0x213   : > { %v860_v29 = vsub.f32 %v2483_v3, %v818_v16  ;;  %v861_v42 = vsub.f32 %v2486_v4, %v818_v16 }
 0x215   : > { %v1711_v25 = vpop.eup %1710  ;;  %v900_v43 = vmul.f32 1.442695, %v860_v29  ;;  %v902_v61 = vmul.f32 1.442695, %v861_v42 }
 0x216   : > { %v1713_v34 = vpop.eup %1712  ;;  %1021 = vmatmul.f32.gmra.mxu2 %v1711_v25 }
 0x217   : > { %1714 = vpow2.f32 %v900_v43  ;;  %1086 = vmatmul.f32.gmra.mxu3 %v1713_v34  ;;  %v957_v62 = vadd.f32 %v1713_v34, %v1711_v25 }
 0x218   : > { %1716 = vpow2.f32 %v902_v61 }
 0x219   : > { %958 = vadd.xlane.f32.xlu1 %v957_v62 }
 0x21a   : > { %v821_v44 = vpop.xlane.xlu1 %820 }
 0x21b   : > { %v862_v45 = vsub.f32 %v2491_v13, %v821_v44  ;;  %v863_v6 = vsub.f32 %v2494_v14, %v821_v44 }
 0x21d   : > { %v1715_v52 = vpop.eup %1714  ;;  %v904_v55 = vmul.f32 1.442695, %v862_v45  ;;  %v906_v3 = vmul.f32 1.442695, %v863_v6 }
 0x21e   : > { %v1717_v58 = vpop.eup %1716  ;;  %1024 = vmatmul.f32.gmra.mxu2 %v1715_v52 }
 0x21f   : > { %1718 = vpow2.f32 %v904_v55  ;;  %1089 = vmatmul.f32.gmra.mxu3 %v1717_v58  ;;  %v960_v4 = vadd.f32 %v1717_v58, %v1715_v52 }
 0x220   : > { %1720 = vpow2.f32 %v906_v3 }
 0x221   : > { %961 = vadd.xlane.f32.xlu2 %v960_v4 }
 0x222   : > { %v824_v59 = vpop.xlane.xlu1 %823 }
 0x223   : > { %v864_v60 = vsub.f32 %v2499_v20, %v824_v59  ;;  %v865_v63 = vsub.f32 %v2502_v21, %v824_v59 }
 0x225   : > { %v1719_v5 = vpop.eup %1718  ;;  %v908_v0 = vmul.f32 1.442695, %v864_v60  ;;  %v910_v13 = vmul.f32 1.442695, %v865_v63 }
 0x226   : > { %v1721_v48 = vpop.eup %1720  ;;  %1027 = vmatmul.f32.gmra.mxu2 %v1719_v5 }
 0x227   : > { %1722 = vpow2.f32 %v908_v0  ;;  %1092 = vmatmul.f32.gmra.mxu3 %v1721_v48  ;;  %v963_v14 = vadd.f32 %v1721_v48, %v1719_v5 }
 0x228   : > { %1724 = vpow2.f32 %v910_v13 }
 0x229   : > { %964 = vadd.xlane.f32.xlu1 %v963_v14 }
 0x22a   : > { %v827_v9 = vpop.xlane.xlu1 %826 }
 0x22b   : > { %v866_v12 = vsub.f32 %v2507_v27, %v827_v9  ;;  %v867_v17 = vsub.f32 %v2510_v28, %v827_v9 }
 0x22d   : > { %v1723_v49 = vpop.eup %1722  ;;  %v912_v50 = vmul.f32 1.442695, %v866_v12  ;;  %v914_v20 = vmul.f32 1.442695, %v867_v17 }
 0x22e   : > { %v1725_v18 = vpop.eup %1724  ;;  %1030 = vmatmul.f32.gmra.mxu2 %v1723_v49 }
 0x22f   : > { %1726 = vpow2.f32 %v912_v50  ;;  %1095 = vmatmul.f32.gmra.mxu3 %v1725_v18  ;;  %v966_v21 = vadd.f32 %v1725_v18, %v1723_v49 }
 0x230   : > { %1728 = vpow2.f32 %v914_v20 }
 0x231   : > { %967 = vadd.xlane.f32.xlu0 %v966_v21 }
 0x232   : > { %v830_v19 = vpop.xlane.xlu1 %829 }
 0x233   : > { %v868_v31 = vsub.f32 %v2517_v37, %v830_v19  ;;  %v869_v32 = vsub.f32 %v2520_v38, %v830_v19 }
 0x235   : > { %v1727_v53 = vpop.eup %1726  ;;  %v916_v35 = vmul.f32 1.442695, %v868_v31  ;;  %v918_v27 = vmul.f32 1.442695, %v869_v32 }
 0x236   : > { %v1729_v54 = vpop.eup %1728  ;;  %1033 = vmatmul.f32.gmra.mxu2 %v1727_v53 }
 0x237   : > { %1730 = vpow2.f32 %v916_v35  ;;  %1098 = vmatmul.f32.gmra.mxu3 %v1729_v54  ;;  %v969_v28 = vadd.f32 %v1729_v54, %v1727_v53 }
 0x238   : > { %1732 = vpow2.f32 %v918_v27 }
 0x239   : > { %970 = vadd.xlane.f32.xlu1 %v969_v28 }
 0x23a   : > { %v833_v36 = vpop.xlane.xlu1 %832 }
 0x23b   : > { %v870_v39 = vsub.f32 %v2529_v41, %v833_v36  ;;  %v871_v40 = vsub.f32 %v2532_v7, %v833_v36 }
 0x23d   : > { %v1731_v11 = vpop.eup %1730  ;;  %v920_v1 = vmul.f32 1.442695, %v870_v39  ;;  %v922_v37 = vmul.f32 1.442695, %v871_v40 }
 0x23e   : > { %v1733_v56 = vpop.eup %1732  ;;  %1036 = vmatmul.f32.gmra.mxu2 %v1731_v11 }
 0x23f   : > { %1734 = vpow2.f32 %v920_v1  ;;  %1101 = vmatmul.f32.gmra.mxu3 %v1733_v56  ;;  %v972_v38 = vadd.f32 %v1733_v56, %v1731_v11 }
 0x240   : > { %1736 = vpow2.f32 %v922_v37 }
 0x241   : > { %973 = vadd.xlane.f32.xlu1 %v972_v38 }
 0x242   : > { %v836_v24 = vpop.xlane.xlu1 %835 }
 0x243   : > { %v872_v57 = vsub.f32 %v2545_v10, %v836_v24  ;;  %v873_v16 = vsub.f32 %v2548_v47, %v836_v24 }
 0x245   : > { %v1735_v29 = vpop.eup %1734  ;;  %v924_v42 = vmul.f32 1.442695, %v872_v57  ;;  %v926_v41 = vmul.f32 1.442695, %v873_v16 }
 0x246   : > { %v1737_v25 = vpop.eup %1736  ;;  %1039 = vmatmul.f32.gmra.mxu2 %v1735_v29 }
 0x247   : > { %1738 = vpow2.f32 %v924_v42  ;;  %1104 = vmatmul.f32.gmra.mxu3 %v1737_v25  ;;  %v975_v7 = vadd.f32 %v1737_v25, %v1735_v29  ;;  %v2645_v29 = vld [vmem:[%s2783_s21] ss:$0 sm:$0xff]  ;;  %s1904_s21 = scalar_lea.hbm %s2786_s30, 512 }
 0x248   : > { %1740 = vpow2.f32 %v926_v41  ;;  %p1906_p0 = scmp.lt.s32.totalorder %s1904_s21, %s1900_s14 }
 0x249   : > { %976 = vadd.xlane.f32.xlu1 %v975_v7 }
 0x24a   : > { %v839_v43 = vpop.xlane.xlu1 %838  ;;  %p1907_p2 = por %p1906_p0, %p1905_p13 }
 0x24b   : > { %v874_v61 = vsub.f32 %v2559_v2, %v839_v43  ;;  %v875_v34 = vsub.f32 %v2562_v8, %v839_v43 }
 0x24c   : > { %p1908_p4 = pnand %p1907_p2, %p1903_p10 }
 0x24d   : > { %v1739_v62 = vpop.eup %1738  ;;  %v928_v44 = vmul.f32 1.442695, %v874_v61  ;;  %v930_v10 = vmul.f32 1.442695, %v875_v34 }
 0x24e   : > { %v1741_v45 = vpop.eup %1740  ;;  %1042 = vmatmul.f32.gmra.mxu2 %v1739_v62 }
 0x24f   : > { %1742 = vpow2.f32 %v928_v44  ;;  %1107 = vmatmul.f32.gmra.mxu3 %v1741_v45  ;;  %v978_v47 = vadd.f32 %v1741_v45, %v1739_v62 }
 0x250   : > { %1744 = vpow2.f32 %v930_v10 }
 0x251   : > { %979 = vadd.xlane.f32.xlu1 %v978_v47 }
 0x252   : > { %v842_v6 = vpop.xlane.xlu1 %841 }
 0x253   : > { %v876_v52 = vsub.f32 %v2571_v23, %v842_v6  ;;  %v877_v55 = vsub.f32 %v2574_v30, %v842_v6 }
 0x255   : > { %v1743_v3 = vpop.eup %1742  ;;  %v932_v58 = vmul.f32 1.442695, %v876_v52  ;;  %v934_v2 = vmul.f32 1.442695, %v877_v55 }
 0x256   : > { %v1745_v4 = vpop.eup %1744  ;;  %1045 = vmatmul.f32.gmra.mxu2 %v1743_v3 }
 0x257   : > { %1746 = vpow2.f32 %v932_v58  ;;  %1110 = vmatmul.f32.gmra.mxu3 %v1745_v4  ;;  %v981_v8 = vadd.f32 %v1745_v4, %v1743_v3 }
 0x258   : > { %1748 = vpow2.f32 %v934_v2 }
 0x259   : > { %982 = vadd.xlane.f32.xlu1 %v981_v8 }
 0x25a   : > { %v845_v59 = vpop.xlane.xlu1 %844 }
 0x25b   : > { %v878_v60 = vsub.f32 %v2587_v22, %v845_v59  ;;  %v879_v63 = vsub.f32 %v2590_v33, %v845_v59 }
 0x25d   : > { %v1747_v5 = vpop.eup %1746  ;;  %v936_v0 = vmul.f32 1.442695, %v878_v60  ;;  %v938_v23 = vmul.f32 1.442695, %v879_v63 }
 0x25e   : > { %v1749_v13 = vpop.eup %1748  ;;  %1048 = vmatmul.f32.gmra.mxu2 %v1747_v5 }
 0x25f   : > { %1750 = vpow2.f32 %v936_v0  ;;  %1113 = vmatmul.f32.gmra.mxu3 %v1749_v13  ;;  %v984_v30 = vadd.f32 %v1749_v13, %v1747_v5 }
 0x260   : > { %1752 = vpow2.f32 %v938_v23 }
 0x261   : > { %985 = vadd.xlane.f32.xlu1 %v984_v30 }
 0x262   : > { %v848_v48 = vpop.xlane.xlu1 %847 }
 0x263   : > { %v880_v14 = vsub.f32 %v2595_v26, %v848_v48  ;;  %v881_v9 = vsub.f32 %v2598_v15, %v848_v48 }
 0x265   : > { %v1751_v12 = vpop.eup %1750  ;;  %v940_v17 = vmul.f32 1.442695, %v880_v14  ;;  %v942_v22 = vmul.f32 1.442695, %v881_v9 }
 0x266   : > { %v1753_v49 = vpop.eup %1752  ;;  %1051 = vmatmul.f32.gmra.mxu2 %v1751_v12 }
 0x267   : > { %1754 = vpow2.f32 %v940_v17  ;;  %1116 = vmatmul.f32.gmra.mxu3 %v1753_v49  ;;  %v987_v33 = vadd.f32 %v1753_v49, %v1751_v12 }
 0x268   : > { %1756 = vpow2.f32 %v942_v22 }
 0x269   : > { %988 = vadd.xlane.f32.xlu1 %v987_v33 }
 0x26a   : > { %v851_v50 = vpop.xlane.xlu1 %850 }
 0x26b   : > { %v882_v20 = vsub.f32 %v2603_v46, %v851_v50  ;;  %v883_v18 = vsub.f32 %v2606_v51, %v851_v50 }
 0x26d   : > { %v1755_v21 = vpop.eup %1754  ;;  %v944_v19 = vmul.f32 1.442695, %v882_v20  ;;  %v946_v26 = vmul.f32 1.442695, %v883_v18 }
 0x26e   : > { %v1757_v31 = vpop.eup %1756  ;;  %1054 = vmatmul.f32.gmra.mxu2 %v1755_v21 }
 0x26f   : > { %1758 = vpow2.f32 %v944_v19  ;;  %1119 = vmatmul.f32.gmra.mxu3 %v1757_v31  ;;  %v990_v15 = vadd.f32 %v1757_v31, %v1755_v21 }
 0x270   : > { %1760 = vpow2.f32 %v946_v26 }
 0x271   : > { %991 = vadd.xlane.f32.xlu1 %v990_v15 }
 0x274   : > { %v950_v32 = vpop.xlane.xlu1 %949 }
 0x275   : > { %v1759_v53 = vpop.eup %1758  ;;  %1762 = vrcp.f32 %v950_v32  ;;  %v1137_v36 = vand.u32 2147483648, %v950_v32  ;;  %v1135_v40 = vand.u32 2147483647, %v950_v32  ;;  %vm1131_vm1 = vweird.f32 %v950_v32 }
 0x276   : > { %v1761_v35 = vpop.eup %1760  ;;  %1057 = vmatmul.f32.gmra.mxu2 %v1759_v53 }
 0x277   : > { %1122 = vmatmul.f32.gmra.mxu3 %v1761_v35  ;;  %v993_v27 = vadd.f32 %v1761_v35, %v1759_v53  ;;  %v1138_v24 = vor.u32 1.1754944e-38, %v1137_v36  ;;  %vm1136_vm3 = vcmp.eq.f32.partialorder %v1135_v40, 8.507059e+37 }
 0x279   : > { %994 = vadd.xlane.f32.xlu1 %v993_v27 }
 0x27b   : > { %v1763_v46 = vpop.eup %1762 }
 0x27c   : > { %v1127_v51 = vmul.f32 %v1763_v46, %v950_v32  ;;  %v953_v54 = vpop.xlane.xlu1 %952  ;;  %vm1132_vm0 = vweird.f32 %v1763_v46 }
 0x27d   : > { %1764 = vrcp.f32 %v953_v54  ;;  %vm1133_vm2 = vmor %vm1131_vm1, %vm1132_vm0  ;;  %v1151_v43 = vand.u32 2147483648, %v953_v54  ;;  %v1149_v62 = vand.u32 2147483647, %v953_v54  ;;  %vm1145_vm5 = vweird.f32 %v953_v54 }
 0x27e   : > { %v1128_v28 = vsub.f32 1.0, %v1127_v51 }
 0x27f   : > { %v1152_v52 = vor.u32 1.1754944e-38, %v1151_v43  ;;  %vm1150_vm7 = vcmp.eq.f32.partialorder %v1149_v62, 8.507059e+37 }
 0x280   : > { %v1129_v39 = vmul.f32 %v1763_v46, %v1128_v28 }
 0x281   : > { %v1013_v11 = vpop.f32.mrf.mxu2 }
 0x282   : > { %v1078_v1 = vpop.f32.mrf.mxu3  ;;  %v1130_v37 = vadd.f32 %v1763_v46, %v1129_v39 }
 0x283   : > { %v1765_v56 = vpop.eup %1764  ;;  %v1079_v38 = vadd.f32 %v1078_v1, %v1013_v11 }
 0x284   : > { %v1141_v57 = vmul.f32 %v1765_v56, %v953_v54  ;;  %v1134_v16 = vsel %vm1133_vm2, %v1763_v46, %v1130_v37  ;;  %v956_v42 = vpop.xlane.xlu1 %955  ;;  %vm1146_vm4 = vweird.f32 %v1765_v56 }
 0x285   : > { %v1139_v41 = vsel %vm1136_vm3, %v1138_v24, %v1134_v16  ;;  %1766 = vrcp.f32 %v956_v42  ;;  %vm1147_vm6 = vmor %vm1145_vm5, %vm1146_vm4  ;;  %v1165_v59 = vand.u32 2147483648, %v956_v42  ;;  %v1163_v5 = vand.u32 2147483647, %v956_v42 }
 0x286   : > { %v1142_v25 = vsub.f32 1.0, %v1141_v57  ;;  %v1350_v7 = vmul.f32 %v1139_v41, %v1079_v38  ;;  %vm1159_vm9 = vweird.f32 %v956_v42 }
 0x287   : > { %v1166_v14 = vor.u32 1.1754944e-38, %v1165_v59  ;;  %vm1164_vm11 = vcmp.eq.f32.partialorder %v1163_v5, 8.507059e+37 }
 0x288   : > { %v1143_v61 = vmul.f32 %v1765_v56, %v1142_v25  ;;  %v1370_v34 = vmul.f32 %v2645_v29, %v1350_v7 }
 0x289   : > { %v1016_v44 = vpop.f32.mrf.mxu2 }
 0x28a   : > { %1386 = vst [vmem:[%s2649_s25] sm:$0xff] %v1370_v34  ;;  %v1081_v10 = vpop.f32.mrf.mxu3  ;;  %v1144_v45 = vadd.f32 %v1765_v56, %v1143_v61 }
 0x28b   : > { %v1767_v47 = vpop.eup %1766  ;;  %v1082_v6 = vadd.f32 %v1081_v10, %v1016_v44 }
 0x28c   : > { %v1155_v55 = vmul.f32 %v1767_v47, %v956_v42  ;;  %v1148_v3 = vsel %vm1147_vm6, %v1765_v56, %v1144_v45  ;;  %v959_v58 = vpop.xlane.xlu1 %958  ;;  %vm1160_vm8 = vweird.f32 %v1767_v47 }
 0x28d   : > { %v1153_v2 = vsel %vm1150_vm7, %v1152_v52, %v1148_v3  ;;  %1768 = vrcp.f32 %v959_v58  ;;  %vm1161_vm10 = vmor %vm1159_vm9, %vm1160_vm8  ;;  %v1179_v50 = vand.u32 2147483648, %v959_v58  ;;  %v1177_v21 = vand.u32 2147483647, %v959_v58 }
 0x28e   : > { %v1156_v4 = vsub.f32 1.0, %v1155_v55  ;;  %v1351_v8 = vmul.f32 %v1153_v2, %v1082_v6  ;;  %vm1173_vm13 = vweird.f32 %v959_v58 }
 0x28f   : > { %v1180_v53 = vor.u32 1.1754944e-38, %v1179_v50  ;;  %vm1178_vm15 = vcmp.eq.f32.partialorder %v1177_v21, 8.507059e+37 }
 0x290   : > { %v1157_v60 = vmul.f32 %v1767_v47, %v1156_v4  ;;  %v1371_v63 = vmul.f32 %v2645_v29, %v1351_v8 }
 0x291   : > { %v1019_v0 = vpop.f32.mrf.mxu2 }
 0x292   : > { %1387 = vst [vmem:[%s2649_s25 + $0x8] sm:$0xff] %v1371_v63  ;;  %v1084_v23 = vpop.f32.mrf.mxu3  ;;  %v1158_v13 = vadd.f32 %v1767_v47, %v1157_v60 }
 0x293   : > { %v1769_v30 = vpop.eup %1768  ;;  %v1085_v48 = vadd.f32 %v1084_v23, %v1019_v0 }
 0x294   : > { %v1169_v9 = vmul.f32 %v1769_v30, %v959_v58  ;;  %v1162_v12 = vsel %vm1161_vm10, %v1767_v47, %v1158_v13  ;;  %v962_v17 = vpop.xlane.xlu2 %961  ;;  %vm1174_vm12 = vweird.f32 %v1769_v30 }
 0x295   : > { %v1167_v22 = vsel %vm1164_vm11, %v1166_v14, %v1162_v12  ;;  %1770 = vrcp.f32 %v962_v17  ;;  %vm1175_vm14 = vmor %vm1173_vm13, %vm1174_vm12  ;;  %v1193_v36 = vand.u32 2147483648, %v962_v17  ;;  %v1191_v40 = vand.u32 2147483647, %v962_v17 }
 0x296   : > { %v1170_v49 = vsub.f32 1.0, %v1169_v9  ;;  %v1352_v33 = vmul.f32 %v1167_v22, %v1085_v48  ;;  %vm1187_vm1 = vweird.f32 %v962_v17 }
 0x297   : > { %v1194_v24 = vor.u32 1.1754944e-38, %v1193_v36  ;;  %vm1192_vm3 = vcmp.eq.f32.partialorder %v1191_v40, 8.507059e+37 }
 0x298   : > { %v1171_v20 = vmul.f32 %v1769_v30, %v1170_v49  ;;  %v1372_v18 = vmul.f32 %v2645_v29, %v1352_v33 }
 0x299   : > { %v1022_v19 = vpop.f32.mrf.mxu2 }
 0x29a   : > { %1388 = vst [vmem:[%s2649_s25 + $0x10] sm:$0xff] %v1372_v18  ;;  %v1087_v26 = vpop.f32.mrf.mxu3  ;;  %v1172_v31 = vadd.f32 %v1769_v30, %v1171_v20 }
 0x29b   : > { %v1771_v15 = vpop.eup %1770  ;;  %v1088_v32 = vadd.f32 %v1087_v26, %v1022_v19 }
 0x29c   : > { %v1183_v35 = vmul.f32 %v1771_v15, %v962_v17  ;;  %v1176_v27 = vsel %vm1175_vm14, %v1769_v30, %v1172_v31  ;;  %v965_v46 = vpop.xlane.xlu1 %964  ;;  %vm1188_vm0 = vweird.f32 %v1771_v15 }
 0x29d   : > { %v1181_v51 = vsel %vm1178_vm15, %v1180_v53, %v1176_v27  ;;  %1772 = vrcp.f32 %v965_v46  ;;  %vm1189_vm2 = vmor %vm1187_vm1, %vm1188_vm0  ;;  %v1207_v61 = vand.u32 2147483648, %v965_v46  ;;  %v1205_v44 = vand.u32 2147483647, %v965_v46 }
 0x29e   : > { %v1184_v54 = vsub.f32 1.0, %v1183_v35  ;;  %v1353_v28 = vmul.f32 %v1181_v51, %v1088_v32  ;;  %vm1201_vm5 = vweird.f32 %v965_v46 }
 0x29f   : > { %v1208_v55 = vor.u32 1.1754944e-38, %v1207_v61  ;;  %vm1206_vm7 = vcmp.eq.f32.partialorder %v1205_v44, 8.507059e+37 }
 0x2a0   : > { %v1185_v39 = vmul.f32 %v1771_v15, %v1184_v54  ;;  %v1373_v11 = vmul.f32 %v2645_v29, %v1353_v28 }
 0x2a1   : > { %v1025_v1 = vpop.f32.mrf.mxu2 }
 0x2a2   : > { %1389 = vst [vmem:[%s2649_s25 + $0x18] sm:$0xff] %v1373_v11  ;;  %v1090_v37 = vpop.f32.mrf.mxu3  ;;  %v1186_v56 = vadd.f32 %v1771_v15, %v1185_v39 }
 0x2a3   : > { %v1773_v38 = vpop.eup %1772  ;;  %v1091_v57 = vadd.f32 %v1090_v37, %v1025_v1 }
 0x2a4   : > { %v1197_v16 = vmul.f32 %v1773_v38, %v965_v46  ;;  %v1190_v42 = vsel %vm1189_vm2, %v1771_v15, %v1186_v56  ;;  %v968_v41 = vpop.xlane.xlu0 %967  ;;  %vm1202_vm4 = vweird.f32 %v1773_v38 }
 0x2a5   : > { %v1195_v25 = vsel %vm1192_vm3, %v1194_v24, %v1190_v42  ;;  %1774 = vrcp.f32 %v968_v41  ;;  %vm1203_vm6 = vmor %vm1201_vm5, %vm1202_vm4  ;;  %v1221_v60 = vand.u32 2147483648, %v968_v41  ;;  %v1219_v5 = vand.u32 2147483647, %v968_v41 }
 0x2a6   : > { %v1198_v7 = vsub.f32 1.0, %v1197_v16  ;;  %v1354_v43 = vmul.f32 %v1195_v25, %v1091_v57  ;;  %vm1215_vm9 = vweird.f32 %v968_v41 }
 0x2a7   : > { %v1222_v14 = vor.u32 1.1754944e-38, %v1221_v60  ;;  %vm1220_vm11 = vcmp.eq.f32.partialorder %v1219_v5, 8.507059e+37 }
 0x2a8   : > { %v1199_v34 = vmul.f32 %v1773_v38, %v1198_v7  ;;  %v1374_v62 = vmul.f32 %v2645_v29, %v1354_v43 }
 0x2a9   : > { %v1028_v10 = vpop.f32.mrf.mxu2 }
 0x2aa   : > { %1390 = vst [vmem:[%s2649_s25 + $0x20] sm:$0xff] %v1374_v62  ;;  %v1093_v45 = vpop.f32.mrf.mxu3  ;;  %v1200_v47 = vadd.f32 %v1773_v38, %v1199_v34 }
 0x2ab   : > { %v1775_v6 = vpop.eup %1774  ;;  %v1094_v52 = vadd.f32 %v1093_v45, %v1028_v10 }
 0x2ac   : > { %v1211_v3 = vmul.f32 %v1775_v6, %v968_v41  ;;  %v1204_v58 = vsel %vm1203_vm6, %v1773_v38, %v1200_v47  ;;  %v971_v2 = vpop.xlane.xlu1 %970  ;;  %vm1216_vm8 = vweird.f32 %v1775_v6 }
 0x2ad   : > { %v1209_v4 = vsel %vm1206_vm7, %v1208_v55, %v1204_v58  ;;  %1776 = vrcp.f32 %v971_v2  ;;  %vm1217_vm10 = vmor %vm1215_vm9, %vm1216_vm8  ;;  %v1235_v20 = vand.u32 2147483648, %v971_v2  ;;  %v1233_v19 = vand.u32 2147483647, %v971_v2 }
 0x2ae   : > { %v1212_v8 = vsub.f32 1.0, %v1211_v3  ;;  %v1355_v59 = vmul.f32 %v1209_v4, %v1094_v52  ;;  %vm1229_vm13 = vweird.f32 %v971_v2 }
 0x2af   : > { %v1236_v35 = vor.u32 1.1754944e-38, %v1235_v20  ;;  %vm1234_vm15 = vcmp.eq.f32.partialorder %v1233_v19, 8.507059e+37 }
 0x2b0   : > { %v1213_v63 = vmul.f32 %v1775_v6, %v1212_v8  ;;  %v1375_v0 = vmul.f32 %v2645_v29, %v1355_v59 }
 0x2b1   : > { %v1031_v23 = vpop.f32.mrf.mxu2 }
 0x2b2   : > { %1391 = vst [vmem:[%s2649_s25 + $0x28] sm:$0xff] %v1375_v0  ;;  %v1096_v13 = vpop.f32.mrf.mxu3  ;;  %v1214_v30 = vadd.f32 %v1775_v6, %v1213_v63 }
 0x2b3   : > { %v1777_v48 = vpop.eup %1776  ;;  %v1097_v9 = vadd.f32 %v1096_v13, %v1031_v23 }
 0x2b4   : > { %v1225_v12 = vmul.f32 %v1777_v48, %v971_v2  ;;  %v1218_v17 = vsel %vm1217_vm10, %v1775_v6, %v1214_v30  ;;  %v974_v22 = vpop.xlane.xlu1 %973  ;;  %vm1230_vm12 = vweird.f32 %v1777_v48 }
 0x2b5   : > { %v1223_v49 = vsel %vm1220_vm11, %v1222_v14, %v1218_v17  ;;  %1778 = vrcp.f32 %v974_v22  ;;  %vm1231_vm14 = vmor %vm1229_vm13, %vm1230_vm12  ;;  %v1249_v39 = vand.u32 2147483648, %v974_v22  ;;  %v1247_v1 = vand.u32 2147483647, %v974_v22 }
 0x2b6   : > { %v1226_v33 = vsub.f32 1.0, %v1225_v12  ;;  %v1356_v50 = vmul.f32 %v1223_v49, %v1097_v9  ;;  %vm1243_vm1 = vweird.f32 %v974_v22 }
 0x2b7   : > { %v1250_v16 = vor.u32 1.1754944e-38, %v1249_v39  ;;  %vm1248_vm3 = vcmp.eq.f32.partialorder %v1247_v1, 8.507059e+37 }
 0x2b8   : > { %v1227_v18 = vmul.f32 %v1777_v48, %v1226_v33  ;;  %v1376_v21 = vmul.f32 %v2645_v29, %v1356_v50 }
 0x2b9   : > { %v1034_v26 = vpop.f32.mrf.mxu2 }
 0x2ba   : > { %1392 = vst [vmem:[%s2649_s25 + $0x30] sm:$0xff] %v1376_v21  ;;  %v1099_v31 = vpop.f32.mrf.mxu3  ;;  %v1228_v15 = vadd.f32 %v1777_v48, %v1227_v18 }
 0x2bb   : > { %v1779_v32 = vpop.eup %1778  ;;  %v1100_v53 = vadd.f32 %v1099_v31, %v1034_v26 }
 0x2bc   : > { %v1239_v27 = vmul.f32 %v1779_v32, %v974_v22  ;;  %v1232_v46 = vsel %vm1231_vm14, %v1777_v48, %v1228_v15  ;;  %v977_v51 = vpop.xlane.xlu1 %976  ;;  %vm1244_vm0 = vweird.f32 %v1779_v32 }
 0x2bd   : > { %v1237_v54 = vsel %vm1234_vm15, %v1236_v35, %v1232_v46  ;;  %1780 = vrcp.f32 %v977_v51  ;;  %vm1245_vm2 = vmor %vm1243_vm1, %vm1244_vm0  ;;  %v1263_v34 = vand.u32 2147483648, %v977_v51  ;;  %v1261_v10 = vand.u32 2147483647, %v977_v51 }
 0x2be   : > { %v1240_v28 = vsub.f32 1.0, %v1239_v27  ;;  %v1357_v36 = vmul.f32 %v1237_v54, %v1100_v53  ;;  %vm1257_vm5 = vweird.f32 %v977_v51 }
 0x2bf   : > { %v1264_v3 = vor.u32 1.1754944e-38, %v1263_v34  ;;  %vm1262_vm7 = vcmp.eq.f32.partialorder %v1261_v10, 8.507059e+37 }
 0x2c0   : > { %v1241_v40 = vmul.f32 %v1779_v32, %v1240_v28  ;;  %v1377_v11 = vmul.f32 %v2645_v29, %v1357_v36 }
 0x2c1   : > { %v1037_v37 = vpop.f32.mrf.mxu2 }
 0x2c2   : > { %1393 = vst [vmem:[%s2649_s25 + $0x38] sm:$0xff] %v1377_v11  ;;  %v1102_v56 = vpop.f32.mrf.mxu3  ;;  %v1242_v38 = vadd.f32 %v1779_v32, %v1241_v40 }
 0x2c3   : > { %v1781_v24 = vpop.eup %1780  ;;  %v1103_v57 = vadd.f32 %v1102_v56, %v1037_v37 }
 0x2c4   : > { %v1253_v42 = vmul.f32 %v1781_v24, %v977_v51  ;;  %v1246_v41 = vsel %vm1245_vm2, %v1779_v32, %v1242_v38  ;;  %v980_v25 = vpop.xlane.xlu1 %979  ;;  %vm1258_vm4 = vweird.f32 %v1781_v24 }
 0x2c5   : > { %v1251_v7 = vsel %vm1248_vm3, %v1250_v16, %v1246_v41  ;;  %1782 = vrcp.f32 %v980_v25  ;;  %vm1259_vm6 = vmor %vm1257_vm5, %vm1258_vm4  ;;  %v1277_v63 = vand.u32 2147483648, %v980_v25  ;;  %v1275_v23 = vand.u32 2147483647, %v980_v25 }
 0x2c6   : > { %v1254_v43 = vsub.f32 1.0, %v1253_v42  ;;  %v1358_v61 = vmul.f32 %v1251_v7, %v1103_v57  ;;  %vm1271_vm9 = vweird.f32 %v980_v25 }
 0x2c7   : > { %v1278_v12 = vor.u32 1.1754944e-38, %v1277_v63  ;;  %vm1276_vm11 = vcmp.eq.f32.partialorder %v1275_v23, 8.507059e+37 }
 0x2c8   : > { %v1255_v62 = vmul.f32 %v1781_v24, %v1254_v43  ;;  %v1378_v44 = vmul.f32 %v2645_v29, %v1358_v61 }
 0x2c9   : > { %v1040_v45 = vpop.f32.mrf.mxu2 }
 0x2ca   : > { %1394 = vst [vmem:[%s2649_s25 + $0x40] sm:$0xff] %v1378_v44  ;;  %v1105_v47 = vpop.f32.mrf.mxu3  ;;  %v1256_v6 = vadd.f32 %v1781_v24, %v1255_v62 }
 0x2cb   : > { %v1783_v52 = vpop.eup %1782  ;;  %v1106_v55 = vadd.f32 %v1105_v47, %v1040_v45 }
 0x2cc   : > { %v1267_v58 = vmul.f32 %v1783_v52, %v980_v25  ;;  %v1260_v2 = vsel %vm1259_vm6, %v1781_v24, %v1256_v6  ;;  %v983_v4 = vpop.xlane.xlu1 %982  ;;  %vm1272_vm8 = vweird.f32 %v1783_v52 }
 0x2cd   : > { %v1265_v8 = vsel %vm1262_vm7, %v1264_v3, %v1260_v2  ;;  %1784 = vrcp.f32 %v983_v4  ;;  %vm1273_vm10 = vmor %vm1271_vm9, %vm1272_vm8  ;;  %v1291_v18 = vand.u32 2147483648, %v983_v4  ;;  %v1289_v26 = vand.u32 2147483647, %v983_v4 }
 0x2ce   : > { %v1268_v59 = vsub.f32 1.0, %v1267_v58  ;;  %v1359_v60 = vmul.f32 %v1265_v8, %v1106_v55  ;;  %vm1285_vm13 = vweird.f32 %v983_v4 }
 0x2cf   : > { %v1292_v27 = vor.u32 1.1754944e-38, %v1291_v18  ;;  %vm1290_vm15 = vcmp.eq.f32.partialorder %v1289_v26, 8.507059e+37 }
 0x2d0   : > { %v1269_v5 = vmul.f32 %v1783_v52, %v1268_v59  ;;  %v1379_v0 = vmul.f32 %v2645_v29, %v1359_v60 }
 0x2d1   : > { %v1043_v13 = vpop.f32.mrf.mxu2 }
 0x2d2   : > { %1395 = vst [vmem:[%s2649_s25 + $0x48] sm:$0xff] %v1379_v0  ;;  %v1108_v30 = vpop.f32.mrf.mxu3  ;;  %v1270_v48 = vadd.f32 %v1783_v52, %v1269_v5 }
 0x2d3   : > { %v1785_v14 = vpop.eup %1784  ;;  %v1109_v9 = vadd.f32 %v1108_v30, %v1043_v13 }
 0x2d4   : > { %v1281_v17 = vmul.f32 %v1785_v14, %v983_v4  ;;  %v1274_v22 = vsel %vm1273_vm10, %v1783_v52, %v1270_v48  ;;  %v986_v49 = vpop.xlane.xlu1 %985  ;;  %vm1286_vm12 = vweird.f32 %v1785_v14 }
 0x2d5   : > { %v1279_v33 = vsel %vm1276_vm11, %v1278_v12, %v1274_v22  ;;  %1786 = vrcp.f32 %v986_v49  ;;  %vm1287_vm14 = vmor %vm1285_vm13, %vm1286_vm12  ;;  %v1305_v40 = vand.u32 2147483648, %v986_v49  ;;  %v1303_v37 = vand.u32 2147483647, %v986_v49 }
 0x2d6   : > { %v1282_v50 = vsub.f32 1.0, %v1281_v17  ;;  %v1360_v20 = vmul.f32 %v1279_v33, %v1109_v9  ;;  %vm1299_vm1 = vweird.f32 %v986_v49 }
 0x2d7   : > { %v1306_v42 = vor.u32 1.1754944e-38, %v1305_v40  ;;  %vm1304_vm3 = vcmp.eq.f32.partialorder %v1303_v37, 8.507059e+37 }
 0x2d8   : > { %v1283_v21 = vmul.f32 %v1785_v14, %v1282_v50  ;;  %v1380_v19 = vmul.f32 %v2645_v29, %v1360_v20 }
 0x2d9   : > { %v1046_v31 = vpop.f32.mrf.mxu2 }
 0x2da   : > { %1396 = vst [vmem:[%s2649_s25 + $0x50] sm:$0xff] %v1380_v19  ;;  %v1111_v15 = vpop.f32.mrf.mxu3  ;;  %v1284_v32 = vadd.f32 %v1785_v14, %v1283_v21 }
 0x2db   : > { %v1787_v53 = vpop.eup %1786  ;;  %v1112_v35 = vadd.f32 %v1111_v15, %v1046_v31 }
 0x2dc   : > { %v1295_v46 = vmul.f32 %v1787_v53, %v986_v49  ;;  %v1288_v51 = vsel %vm1287_vm14, %v1785_v14, %v1284_v32  ;;  %v989_v54 = vpop.xlane.xlu1 %988  ;;  %vm1300_vm0 = vweird.f32 %v1787_v53 }
 0x2dd   : > { %v1293_v28 = vsel %vm1290_vm15, %v1292_v27, %v1288_v51  ;;  %1788 = vrcp.f32 %v989_v54  ;;  %vm1301_vm2 = vmor %vm1299_vm1, %vm1300_vm0  ;;  %v1319_v62 = vand.u32 2147483648, %v989_v54  ;;  %v1317_v45 = vand.u32 2147483647, %v989_v54 }
 0x2de   : > { %v1296_v36 = vsub.f32 1.0, %v1295_v46  ;;  %v1361_v39 = vmul.f32 %v1293_v28, %v1112_v35  ;;  %vm1313_vm5 = vweird.f32 %v989_v54 }
 0x2df   : > { %v1320_v58 = vor.u32 1.1754944e-38, %v1319_v62  ;;  %vm1318_vm7 = vcmp.eq.f32.partialorder %v1317_v45, 8.507059e+37 }
 0x2e0   : > { %v1297_v11 = vmul.f32 %v1787_v53, %v1296_v36  ;;  %v1381_v1 = vmul.f32 %v2645_v29, %v1361_v39 }
 0x2e1   : > { %v1049_v56 = vpop.f32.mrf.mxu2 }
 0x2e2   : > { %1397 = vst [vmem:[%s2649_s25 + $0x58] sm:$0xff] %v1381_v1  ;;  %v1114_v38 = vpop.f32.mrf.mxu3  ;;  %v1298_v24 = vadd.f32 %v1787_v53, %v1297_v11 }
 0x2e3   : > { %v1789_v57 = vpop.eup %1788  ;;  %v1115_v16 = vadd.f32 %v1114_v38, %v1049_v56 }
 0x2e4   : > { %v1309_v41 = vmul.f32 %v1789_v57, %v989_v54  ;;  %v1302_v25 = vsel %vm1301_vm2, %v1787_v53, %v1298_v24  ;;  %v992_v7 = vpop.xlane.xlu1 %991  ;;  %vm1314_vm4 = vweird.f32 %v1789_v57 }
 0x2e5   : > { %v1307_v43 = vsel %vm1304_vm3, %v1306_v42, %v1302_v25  ;;  %1790 = vrcp.f32 %v992_v7  ;;  %vm1315_vm6 = vmor %vm1313_vm5, %vm1314_vm4  ;;  %v1333_v5 = vand.u32 2147483648, %v992_v7  ;;  %v1331_v13 = vand.u32 2147483647, %v992_v7 }
 0x2e6   : > { %v1310_v61 = vsub.f32 1.0, %v1309_v41  ;;  %v1362_v34 = vmul.f32 %v1307_v43, %v1115_v16  ;;  %vm1327_vm9 = vweird.f32 %v992_v7 }
 0x2e7   : > { %v1334_v17 = vor.u32 1.1754944e-38, %v1333_v5  ;;  %vm1332_vm11 = vcmp.eq.f32.partialorder %v1331_v13, 8.507059e+37 }
 0x2e8   : > { %v1311_v44 = vmul.f32 %v1789_v57, %v1310_v61  ;;  %v1382_v10 = vmul.f32 %v2645_v29, %v1362_v34 }
 0x2e9   : > { %v1052_v47 = vpop.f32.mrf.mxu2 }
 0x2ea   : > { %1398 = vst [vmem:[%s2649_s25 + $0x60] sm:$0xff] %v1382_v10  ;;  %v1117_v6 = vpop.f32.mrf.mxu3  ;;  %v1312_v52 = vadd.f32 %v1789_v57, %v1311_v44 }
 0x2eb   : > { %v1791_v55 = vpop.eup %1790  ;;  %v1118_v3 = vadd.f32 %v1117_v6, %v1052_v47 }
 0x2ec   : > { %v1323_v2 = vmul.f32 %v1791_v55, %v992_v7  ;;  %v1316_v4 = vsel %vm1315_vm6, %v1789_v57, %v1312_v52  ;;  %v995_v8 = vpop.xlane.xlu1 %994  ;;  %vm1328_vm8 = vweird.f32 %v1791_v55 }
 0x2ed   : > { %v1321_v59 = vsel %vm1318_vm7, %v1320_v58, %v1316_v4  ;;  %1792 = vrcp.f32 %v995_v8  ;;  %vm1329_vm10 = vmor %vm1327_vm9, %vm1328_vm8  ;;  %v1347_v18 = vand.u32 2147483648, %v995_v8  ;;  %v1345_v19 = vand.u32 2147483647, %v995_v8 }
 0x2ee   : > { %v1324_v60 = vsub.f32 1.0, %v1323_v2  ;;  %v1363_v63 = vmul.f32 %v1321_v59, %v1118_v3  ;;  %vm1341_vm13 = vweird.f32 %v995_v8 }
 0x2ef   : > { %v1348_v53 = vor.u32 1.1754944e-38, %v1347_v18  ;;  %vm1346_vm15 = vcmp.eq.f32.partialorder %v1345_v19, 8.507059e+37 }
 0x2f0   : > { %v1325_v0 = vmul.f32 %v1791_v55, %v1324_v60  ;;  %v1383_v23 = vmul.f32 %v2645_v29, %v1363_v63 }
 0x2f1   : > { %v1055_v30 = vpop.f32.mrf.mxu2 }
 0x2f2   : > { %1399 = vst [vmem:[%s2649_s25 + $0x68] sm:$0xff] %v1383_v23  ;;  %v1120_v48 = vpop.f32.mrf.mxu3  ;;  %v1326_v14 = vadd.f32 %v1791_v55, %v1325_v0 }
 0x2f3   : > { %v1793_v9 = vpop.eup %1792  ;;  %v1121_v12 = vadd.f32 %v1120_v48, %v1055_v30 }
 0x2f4   : > { %v1337_v22 = vmul.f32 %v1793_v9, %v995_v8  ;;  %v1330_v49 = vsel %vm1329_vm10, %v1791_v55, %v1326_v14  ;;  %vm1342_vm12 = vweird.f32 %v1793_v9 }
 0x2f5   : > { %v1335_v33 = vsel %vm1332_vm11, %v1334_v17, %v1330_v49  ;;  %vm1343_vm14 = vmor %vm1341_vm13, %vm1342_vm12 }
 0x2f6   : > { %v1338_v50 = vsub.f32 1.0, %v1337_v22  ;;  %v1364_v20 = vmul.f32 %v1335_v33, %v1121_v12 }
 0x2f8   : > { %v1339_v21 = vmul.f32 %v1793_v9, %v1338_v50  ;;  %v1384_v26 = vmul.f32 %v2645_v29, %v1364_v20 }
 0x2f9   : > { %v1058_v31 = vpop.f32.mrf.mxu2 }
 0x2fa   : > { %1400 = vst [vmem:[%s2649_s25 + $0x70] sm:$0xff] %v1384_v26  ;;  %v1123_v15 = vpop.f32.mrf.mxu3  ;;  %v1340_v32 = vadd.f32 %v1793_v9, %v1339_v21 }
 0x2fb   : > { %v1124_v35 = vadd.f32 %v1123_v15, %v1058_v31 }
 0x2fc   : > { %v1344_v27 = vsel %vm1343_vm14, %v1793_v9, %v1340_v32 }
 0x2fd   : > { %v1349_v46 = vsel %vm1346_vm15, %v1348_v53, %v1344_v27 }
 0x2fe   : > { %v1365_v51 = vmul.f32 %v1349_v46, %v1124_v35 }
 0x300   : > { %v1385_v54 = vmul.f32 %v2645_v29, %v1365_v51 }
 0x302   : > { %1401 = vst [vmem:[%s2649_s25 + $0x78] sm:$0xff] %v1385_v54 }
 0x303   : > { %1911 = shalt.err (!%p1908_p4)
}
 0x304   : > { %s2018_s6 = smov 128   ;;  %s2019_s25 = smov 8  }
 0x305   : > { %1586 = dma.vmem_to_hbm [thread:$0]  (%p2185_p9), %s1418_s13, 2048, %s1420_s11, %s1403_s29, %s2018_s6, %s2018_s6, %s2019_s25  }
 0x306 PF: > { %s2788_s5 = sld [smem:[#allocation13_spill]]  ;;  %p1603_p7 = scmp.ge.s32.totalorder %s2014_s28, 2 }
 0x308   : > { %p1599_p8 = pnand %p1603_p7, %p2189_p1 }
 0x30a   : > { %p1600_p3 = pneg %p1599_p8 }
 0x30c   : > { %s1434_s18 = sand.u32 1, %s2788_s5  }
 0x30d   : > { %s1435_s24 = scalar_lea.sflag [#allocation4], %s1434_s18 }
 0x30e   : > { %1969 = dma.done.wait (%p1600_p3), %s1435_s24, 2048  }
 0x30f   : > { %1971 = vsyncadd (%p1600_p3), %s1435_s24, 4294965248  ;;  %s24_s28 = sadd.s32 1, %s2014_s28   ;;  %s2790_s10 = sld [smem:[#allocation16_spill]] }
 0x310   : > { %p21_p11 = scmp.ge.s32.totalorder %s24_s28, 6   ;;  %s2791_s9 = sld [smem:[#allocation18_spill]] }
 0x311   : > { %s2792_s18 = smov %s1978_s19  ;;  %s2793_s19 = smov %s1982_s20 }
 0x312   : > { %s2794_s20 = smov %s2202_s12  ;;  %s2795_s21 = smov %s1990_s22 }
 0x313   : > { %s2796_s22 = smov %s1994_s23  ;;  %s2797_s23 = smov %s2199_s0 }
 0x314   : > { %s2798_s24 = smov %s2006_s26  ;;  %s2799_s25 = smov %s2010_s27 }
 0x315   : > { %s2800_s26 = smov %s2790_s10  ;;  %23 = sbr.rel (!%p21_p11) target bundleno = 17 (0x11), region = 109 }
 0x316   : > { %s2801_s27 = smov %s2791_s9 }
 0x31a   :  { %1441 = vsyncpa [#allocation3], 1 }
 0x31b   :  { %1443 = vsyncpa [#allocation3 + $0x1], 1 }
 0x31c   :  { %1444 = vsyncpa [#allocation6], 1 }
 0x31d   :  { %1446 = vsyncpa [#allocation6 + $0x1], 1 }
 0x31e   :  { %1447 = vsyncpa [#allocation4], 1 }
 0x31f   :  { %1449 = vsyncpa [#allocation4 + $0x1], 1 }

</bundles_post_ra>
